<compile_context>
chip_gen: v6e
topology: v6e:2x2x1
jax: 0.10.0
libtpu: 0.0.40
codegen_flags: <defaults>
</compile_context>

<pallas_src>
import math

import jax
import jax.numpy as jnp
from jax.experimental import pallas as pl
from jax.experimental.pallas import tpu as pltpu

# Problem sizes (small, consistent with the module).
B = 2        # batch
S = 8        # decoder num_steps
SE = 8       # encoder sequence length
H = 32       # num_hiddens (= key_size = query_size = value_size, norm_shape = [H])
NH = 4       # num_heads
HD = H // NH
F = 64       # ffn_num_hiddens
EPS = 1e-5               # torch.nn.LayerNorm default eps
MASK_VALUE = -1000000.0  # value used by d2l sequence_mask


# ----------------------------- Pallas kernel ---------------------------------

def _layernorm(v, g, b):
    mu = jnp.mean(v, axis=-1, keepdims=True)
    var = jnp.mean((v - mu) ** 2, axis=-1, keepdims=True)
    return (v - mu) * jax.lax.rsqrt(var + EPS) * g + b


def decoder_block_kernel(valid_ref,                        # scalar-prefetch: [B] int32 (SMEM)
                         x_ref, enc_ref,                   # [B*S, H], [B*SE, H]
                         wqkv1_ref, wo1_ref,               # [NH,H,3HD], [NH,HD,H]
                         wq2_ref, wkv2_ref, wo2_ref,       # [NH,H,HD], [NH,H,2HD], [NH,HD,H]
                         g1_ref, b1_ref, g2_ref, b2_ref, g3_ref, b3_ref,
                         wf1_ref, bf1_ref, wf2_ref, bf2_ref,
                         out_ref):                         # [B*S, H]
    x = x_ref[...]          # [B*S, H]
    enc = enc_ref[...]      # [B*SE, H]

    # Additive causal mask bias, built once (scale already folded into Wq).
    qi = jax.lax.broadcasted_iota(jnp.int32, (S, S), 0)
    ki = jax.lax.broadcasted_iota(jnp.int32, (S, S), 1)
    causal_bias = jnp.where(ki <= qi, 0.0, MASK_VALUE)     # [S, S]

    def project(src, w_h):
        # src [N, H], w_h [NH, H, E] -> [NH, N, E]  (heads as the batch dim).
        src_b = jnp.broadcast_to(src[None], (NH,) + src.shape)
        return jax.lax.dot_general(src_b, w_h, (((2,), (1,)), ((0,), (0,))),
                                   preferred_element_type=jnp.float32)

    def attend(q_h, k_h, v_h, bias):
        # q_h [NH, Sq, HD]; k_h, v_h [NH, Sk, HD]; bias broadcastable to [NH, Sq, Sk].
        s = jax.lax.dot_general(q_h, k_h, (((2,), (2,)), ((0,), (0,))),
                                preferred_element_type=jnp.float32)
        s = s + bias
        s = s - jnp.max(s, axis=-1, keepdims=True)
        e = jnp.exp(s)
        p = e * pl.reciprocal(jnp.sum(e, axis=-1, keepdims=True), approx=True)
        return jax.lax.dot_general(p, v_h, (((2,), (1,)), ((0,), (0,))),
                                   preferred_element_type=jnp.float32)

    def mha(q_heads, k_heads, v_heads, wo_h, Sq, Sk, bias_fn):
        # Per-batch attention cores (B=2, statically unrolled), batched over heads.
        ctx = jnp.concatenate(
            [attend(q_heads[:, b * Sq:(b + 1) * Sq, :],
                    k_heads[:, b * Sk:(b + 1) * Sk, :],
                    v_heads[:, b * Sk:(b + 1) * Sk, :],
                    bias_fn(b)) for b in range(B)],
            axis=1)                                        # [NH, B*Sq, HD]
        # Output projection with head-split W_o, then sum over heads
        # (avoids transposing / re-concatenating the head dimension).
        o = jax.lax.dot_general(ctx, wo_h, (((2,), (1,)), ((0,), (0,))),
                                preferred_element_type=jnp.float32)  # [NH, B*Sq, H]
        return jnp.sum(o, axis=0)                          # [B*Sq, H]

    # --- self attention with causal mask (training-mode dec_valid_lens = [1..S]) ---
    qkv = project(x, wqkv1_ref[...])                       # [NH, B*S, 3*HD]
    x2 = mha(qkv[:, :, 0:HD], qkv[:, :, HD:2 * HD], qkv[:, :, 2 * HD:3 * HD],
             wo1_ref[...], S, S, lambda b: causal_bias)
    y = _layernorm(x + x2, g1_ref[...], b1_ref[...])

    # --- cross attention, keys masked by per-batch encoder valid length ---
    def cross_bias(b):
        vl = valid_ref[b]                                  # SMEM scalar read
        kk = jax.lax.broadcasted_iota(jnp.int32, (1, SE), 1)
        return jnp.where(kk < vl, 0.0, MASK_VALUE)         # [1, SE]

    q2 = project(y, wq2_ref[...])                          # [NH, B*S, HD]
    kv2 = project(enc, wkv2_ref[...])                      # [NH, B*SE, 2*HD]
    y2 = mha(q2, kv2[:, :, 0:HD], kv2[:, :, HD:2 * HD],
             wo2_ref[...], S, SE, cross_bias)
    z = _layernorm(y + y2, g2_ref[...], b2_ref[...])

    # --- position-wise FFN: dense1 -> relu -> dense2 (full [B*S, .] width) ---
    h1 = jnp.maximum(
        jnp.dot(z, wf1_ref[...], preferred_element_type=jnp.float32) + bf1_ref[...],
        0.0)
    ffn_out = jnp.dot(h1, wf2_ref[...], preferred_element_type=jnp.float32) + bf2_ref[...]
    out_ref[...] = _layernorm(z + ffn_out, g3_ref[...], b3_ref[...])


# ----------------------------- Wrapper ---------------------------------------

def _zero_map(ndim):
    def idx(i, vl):
        return (0,) * ndim
    return idx


def _prep_weights(params):
    """Host-side layout plumbing: fuse QKV, fold the 1/sqrt(HD) scale into Wq,
    and restructure weights head-major so the kernel needs no transposes."""
    scale = 1.0 / math.sqrt(HD)

    def heads_in(w):   # [H, H] -> [NH, H, HD]  (split output columns into heads)
        return w.reshape(H, NH, HD).transpose(1, 0, 2)

    def heads_out(w):  # [H, H] -> [NH, HD, H]  (split input rows into heads)
        return w.reshape(NH, HD, H)

    wqkv1 = jnp.concatenate([heads_in(params["wq1"] * scale),
                             heads_in(params["wk1"]),
                             heads_in(params["wv1"])], axis=-1)   # [NH, H, 3*HD]
    wo1 = heads_out(params["wo1"])                                # [NH, HD, H]
    wq2 = heads_in(params["wq2"] * scale)                         # [NH, H, HD]
    wkv2 = jnp.concatenate([heads_in(params["wk2"]),
                            heads_in(params["wv2"])], axis=-1)    # [NH, H, 2*HD]
    wo2 = heads_out(params["wo2"])                                # [NH, HD, H]

    return [wqkv1, wo1, wq2, wkv2, wo2,
            params["g1"], params["b1"], params["g2"], params["b2"],
            params["g3"], params["b3"],
            params["wf1"], params["bf1"], params["wf2"], params["bf2"]]


def decoder_block_forward(X, state, params, block_index=0):
    """Mirrors DecoderBlock.forward(X, state) (training-style step, dropout=0)."""
    enc_outputs, enc_valid_lens, caches = state
    if caches[block_index] is not None:
        # TODO(synk): incremental-decoding cache-concat path (state[2][i] is not None)
        # is not implemented in the kernel; only the training-style step is supported.
        raise NotImplementedError("cache-concat inference path not implemented")
    key_values = X
    new_caches = list(caches)
    new_caches[block_index] = key_values

    weights = _prep_weights(params)
    x2d = X.reshape(B * S, H)              # host-side reshape (free) -> dense block
    enc2d = enc_outputs.reshape(B * SE, H)

    weight_specs = [pl.BlockSpec(w.shape, _zero_map(w.ndim)) for w in weights]

    # Single grid step: all B rows in one invocation (overhead-bound regime).
    grid_spec = pltpu.PrefetchScalarGridSpec(
        num_scalar_prefetch=1,
        grid=(1,),
        in_specs=[pl.BlockSpec((B * S, H), lambda i, vl: (0, 0)),
                  pl.BlockSpec((B * SE, H), lambda i, vl: (0, 0))] + weight_specs,
        out_specs=pl.BlockSpec((B * S, H), lambda i, vl: (0, 0)),
    )

    out = pl.pallas_call(
        decoder_block_kernel,
        out_shape=jax.ShapeDtypeStruct((B * S, H), jnp.float32),
        grid_spec=grid_spec,
        compiler_params=pltpu.CompilerParams(
            dimension_semantics=("arbitrary",)),
    )(enc_valid_lens.astype(jnp.int32), x2d, enc2d, *weights)

    return out.reshape(B, S, H), (enc_outputs, enc_valid_lens, new_caches)


# ----------------------------- Parameters ------------------------------------

def init_params(key):
    keys = jax.random.split(key, 18)

    def w(k, shape, scale=0.05):
        return scale * jax.random.normal(k, shape, dtype=jnp.float32)

    return dict(
        wq1=w(keys[0], (H, H)), wk1=w(keys[1], (H, H)),
        wv1=w(keys[2], (H, H)), wo1=w(keys[3], (H, H)),
        wq2=w(keys[4], (H, H)), wk2=w(keys[5], (H, H)),
        wv2=w(keys[6], (H, H)), wo2=w(keys[7], (H, H)),
        g1=1.0 + w(keys[8], (1, H), 0.1), b1=w(keys[9], (1, H), 0.1),
        g2=1.0 + w(keys[10], (1, H), 0.1), b2=w(keys[11], (1, H), 0.1),
        g3=1.0 + w(keys[12], (1, H), 0.1), b3=w(keys[13], (1, H), 0.1),
        wf1=w(keys[14], (H, F)), bf1=w(keys[15], (1, F), 0.1),
        wf2=w(keys[16], (F, H)), bf2=w(keys[17], (1, H), 0.1),
    )


# ----------------------------- Pure-JAX reference ----------------------------

def _ln_ref(v, g, b):
    mu = v.mean(-1, keepdims=True)
    var = ((v - mu) ** 2).mean(-1, keepdims=True)
    return (v - mu) / jnp.sqrt(var + EPS) * g + b


def _mha_ref(qx, kvx, wq, wk, wv, wo, mask):
    Bq, Sq, _ = qx.shape
    Sk = kvx.shape[1]
    q = (qx @ wq).reshape(Bq, Sq, NH, HD).transpose(0, 2, 1, 3)
    k = (kvx @ wk).reshape(Bq, Sk, NH, HD).transpose(0, 2, 1, 3)
    v = (kvx @ wv).reshape(Bq, Sk, NH, HD).transpose(0, 2, 1, 3)
    s = jnp.einsum('bhqd,bhkd->bhqk', q, k) / math.sqrt(HD)
    s = jnp.where(mask[:, None, :, :], s, MASK_VALUE)
    p = jax.nn.softmax(s, axis=-1)
    o = jnp.einsum('bhqk,bhkd->bhqd', p, v).transpose(0, 2, 1, 3).reshape(Bq, Sq, H)
    return o @ wo


def reference_forward(X, state, params):
    enc_outputs, enc_valid_lens, _ = state
    causal = jnp.broadcast_to(
        jnp.arange(S)[None, :] <= jnp.arange(S)[:, None], (B, S, S))
    x2 = _mha_ref(X, X, params["wq1"], params["wk1"], params["wv1"], params["wo1"],
                  causal)
    y = _ln_ref(X + x2, params["g1"], params["b1"])
    cross = jnp.broadcast_to(
        jnp.arange(SE)[None, None, :] < enc_valid_lens[:, None, None], (B, S, SE))
    y2 = _mha_ref(y, enc_outputs, params["wq2"], params["wk2"], params["wv2"],
                  params["wo2"], cross)
    z = _ln_ref(y + y2, params["g2"], params["b2"])
    ffn = jnp.maximum(z @ params["wf1"] + params["bf1"], 0.0) @ params["wf2"] + params["bf2"]
    return _ln_ref(z + ffn, params["g3"], params["b3"])


# ----------------------------- Main -------------------------------------------

if __name__ == "__main__":
    key = jax.random.PRNGKey(0)
    kx, ke, kp = jax.random.split(key, 3)
    X = jax.random.normal(kx, (B, S, H), dtype=jnp.float32)
    enc_outputs = jax.random.normal(ke, (B, SE, H), dtype=jnp.float32)
    enc_valid_lens = jnp.array([5, 8], dtype=jnp.int32)
    params = init_params(kp)

    state = (enc_outputs, enc_valid_lens, [None])  # state[2][i] is None -> key_values = X
    out, new_state = decoder_block_forward(X, state, params, block_index=0)
    out = jax.block_until_ready(out)

    ref = reference_forward(X, state, params)
    assert out.shape == (B, S, H)
    # Slightly looser tolerance than before to accommodate the EUP approximate
    # reciprocal used for the softmax normalization (perf-review item).
    max_err = jnp.max(jnp.abs(out - ref))
    assert jnp.allclose(out, ref, atol=2e-3, rtol=2e-3), f"max abs err = {max_err}"
    assert jnp.allclose(new_state[2][0], X)  # updated key/value cache

    print("KERNEL_OK")
</pallas_src>

<mosaic_0001>
module attributes {stable_mosaic.version = 11 : i64} {
  func.func @decoder_block_kernel(%arg0: i32, %arg1: memref<2xi32, #tpu.memory_space<smem>>, %arg2: memref<16x32xf32, #tpu.memory_space<vmem>>, %arg3: memref<16x32xf32, #tpu.memory_space<vmem>>, %arg4: memref<4x32x24xf32, #tpu.memory_space<vmem>>, %arg5: memref<4x8x32xf32, #tpu.memory_space<vmem>>, %arg6: memref<4x32x8xf32, #tpu.memory_space<vmem>>, %arg7: memref<4x32x16xf32, #tpu.memory_space<vmem>>, %arg8: memref<4x8x32xf32, #tpu.memory_space<vmem>>, %arg9: memref<1x32xf32, #tpu.memory_space<vmem>>, %arg10: memref<1x32xf32, #tpu.memory_space<vmem>>, %arg11: memref<1x32xf32, #tpu.memory_space<vmem>>, %arg12: memref<1x32xf32, #tpu.memory_space<vmem>>, %arg13: memref<1x32xf32, #tpu.memory_space<vmem>>, %arg14: memref<1x32xf32, #tpu.memory_space<vmem>>, %arg15: memref<32x64xf32, #tpu.memory_space<vmem>>, %arg16: memref<1x64xf32, #tpu.memory_space<vmem>>, %arg17: memref<64x32xf32, #tpu.memory_space<vmem>>, %arg18: memref<1x32xf32, #tpu.memory_space<vmem>>, %arg19: memref<16x32xf32, #tpu.memory_space<vmem>>) attributes {dimension_semantics = [#tpu.dimension_semantics<arbitrary>], iteration_bounds = array<i64: 1>, scalar_prefetch = 1 : i64, scratch_operands = 0 : i64, tpu.core_type = #tpu.core_type<tc>, window_params = [{pipeline_mode = #tpu.pipeline_mode<synchronous>, transform_indices = @transform_0, window_bounds = array<i64: 16, 32>}, {pipeline_mode = #tpu.pipeline_mode<synchronous>, transform_indices = @transform_1, window_bounds = array<i64: 16, 32>}, {pipeline_mode = #tpu.pipeline_mode<synchronous>, transform_indices = @transform_2, window_bounds = array<i64: 4, 32, 24>}, {pipeline_mode = #tpu.pipeline_mode<synchronous>, transform_indices = @transform_3, window_bounds = array<i64: 4, 8, 32>}, {pipeline_mode = #tpu.pipeline_mode<synchronous>, transform_indices = @transform_4, window_bounds = array<i64: 4, 32, 8>}, {pipeline_mode = #tpu.pipeline_mode<synchronous>, transform_indices = @transform_5, window_bounds = array<i64: 4, 32, 16>}, {pipeline_mode = #tpu.pipeline_mode<synchronous>, transform_indices = @transform_6, window_bounds = array<i64: 4, 8, 32>}, {pipeline_mode = #tpu.pipeline_mode<synchronous>, transform_indices = @transform_7, window_bounds = array<i64: 1, 32>}, {pipeline_mode = #tpu.pipeline_mode<synchronous>, transform_indices = @transform_8, window_bounds = array<i64: 1, 32>}, {pipeline_mode = #tpu.pipeline_mode<synchronous>, transform_indices = @transform_9, window_bounds = array<i64: 1, 32>}, {pipeline_mode = #tpu.pipeline_mode<synchronous>, transform_indices = @transform_10, window_bounds = array<i64: 1, 32>}, {pipeline_mode = #tpu.pipeline_mode<synchronous>, transform_indices = @transform_11, window_bounds = array<i64: 1, 32>}, {pipeline_mode = #tpu.pipeline_mode<synchronous>, transform_indices = @transform_12, window_bounds = array<i64: 1, 32>}, {pipeline_mode = #tpu.pipeline_mode<synchronous>, transform_indices = @transform_13, window_bounds = array<i64: 32, 64>}, {pipeline_mode = #tpu.pipeline_mode<synchronous>, transform_indices = @transform_14, window_bounds = array<i64: 1, 64>}, {pipeline_mode = #tpu.pipeline_mode<synchronous>, transform_indices = @transform_15, window_bounds = array<i64: 64, 32>}, {pipeline_mode = #tpu.pipeline_mode<synchronous>, transform_indices = @transform_16, window_bounds = array<i64: 1, 32>}, {pipeline_mode = #tpu.pipeline_mode<synchronous>, transform_indices = @transform_17, window_bounds = array<i64: 16, 32>}]} {
    %c0 = arith.constant 0 : index
    %c0_0 = arith.constant 0 : index
    %0 = vector.load %arg2[%c0, %c0_0] : memref<16x32xf32, #tpu.memory_space<vmem>>, vector<16x32xf32>
    %c0_1 = arith.constant 0 : index
    %c0_2 = arith.constant 0 : index
    %1 = vector.load %arg3[%c0_1, %c0_2] : memref<16x32xf32, #tpu.memory_space<vmem>>, vector<16x32xf32>
    %2 = tpu.iota {dimensions = array<i32: 0>} : vector<8x8xi32>
    %3 = tpu.iota {dimensions = array<i32: 1>} : vector<8x8xi32>
    %4 = arith.cmpi sle, %3, %2 : vector<8x8xi32>
    %cst = arith.constant 0.000000e+00 : f32
    %cst_3 = arith.constant -1.000000e+06 : f32
    %5 = vector.broadcast %cst : f32 to vector<8x8xf32>
    %6 = vector.broadcast %cst_3 : f32 to vector<8x8xf32>
    %7 = arith.select %4, %5, %6 : vector<8x8xi1>, vector<8x8xf32>
    %c0_4 = arith.constant 0 : index
    %c0_5 = arith.constant 0 : index
    %c0_6 = arith.constant 0 : index
    %8 = vector.load %arg4[%c0_4, %c0_5, %c0_6] : memref<4x32x24xf32, #tpu.memory_space<vmem>>, vector<4x32x24xf32>
    %9 = vector.shape_cast %0 : vector<16x32xf32> to vector<1x16x32xf32>
    %10 = vector.shape_cast %9 : vector<1x16x32xf32> to vector<1x16x32xf32>
    %11 = vector.broadcast %10 : vector<1x16x32xf32> to vector<4x16x32xf32>
    %cst_7 = arith.constant dense<0.000000e+00> : vector<4x16x24xf32>
    %12 = tpu.matmul %11, %8, %cst_7 {dimension_numbers = #tpu.dot_dimension_numbers<[2], [1], [1], [2], [0, 0, 0, 1, 1, 2], [0], [0]>} : vector<4x16x32xf32>, vector<4x32x24xf32>, vector<4x16x24xf32> -> vector<4x16x24xf32>
    %13 = vector.extract_strided_slice %12 {offsets = [0, 0, 0], sizes = [4, 16, 8], strides = [1, 1, 1]} : vector<4x16x24xf32> to vector<4x16x8xf32>
    %14 = vector.extract_strided_slice %12 {offsets = [0, 0, 8], sizes = [4, 16, 8], strides = [1, 1, 1]} : vector<4x16x24xf32> to vector<4x16x8xf32>
    %15 = vector.extract_strided_slice %12 {offsets = [0, 0, 16], sizes = [4, 16, 8], strides = [1, 1, 1]} : vector<4x16x24xf32> to vector<4x16x8xf32>
    %c0_8 = arith.constant 0 : index
    %c0_9 = arith.constant 0 : index
    %c0_10 = arith.constant 0 : index
    %16 = vector.load %arg5[%c0_8, %c0_9, %c0_10] : memref<4x8x32xf32, #tpu.memory_space<vmem>>, vector<4x8x32xf32>
    %17 = vector.extract_strided_slice %13 {offsets = [0, 0, 0], sizes = [4, 8, 8], strides = [1, 1, 1]} : vector<4x16x8xf32> to vector<4x8x8xf32>
    %18 = vector.extract_strided_slice %14 {offsets = [0, 0, 0], sizes = [4, 8, 8], strides = [1, 1, 1]} : vector<4x16x8xf32> to vector<4x8x8xf32>
    %19 = vector.extract_strided_slice %15 {offsets = [0, 0, 0], sizes = [4, 8, 8], strides = [1, 1, 1]} : vector<4x16x8xf32> to vector<4x8x8xf32>
    %cst_11 = arith.constant dense<0.000000e+00> : vector<4x8x8xf32>
    %20 = tpu.matmul %17, %18, %cst_11 {dimension_numbers = #tpu.dot_dimension_numbers<[2], [2], [1], [1], [0, 0, 0, 1, 1, 1], [0], [0]>} : vector<4x8x8xf32>, vector<4x8x8xf32>, vector<4x8x8xf32> -> vector<4x8x8xf32>
    %21 = vector.shape_cast %7 : vector<8x8xf32> to vector<1x8x8xf32>
    %22 = vector.broadcast %21 : vector<1x8x8xf32> to vector<4x8x8xf32>
    %23 = arith.addf %20, %22 : vector<4x8x8xf32>
    %cst_12 = arith.constant dense<0xFF800000> : vector<4x8xf32>
    %24 = vector.multi_reduction <maximumf>, %23, %cst_12 [2] : vector<4x8x8xf32> to vector<4x8xf32>
    %25 = vector.shape_cast %24 : vector<4x8xf32> to vector<4x8x1xf32>
    %26 = vector.broadcast %25 : vector<4x8x1xf32> to vector<4x8x8xf32>
    %27 = arith.subf %23, %26 : vector<4x8x8xf32>
    %28 = math.exp %27 : vector<4x8x8xf32>
    %cst_13 = arith.constant dense<0.000000e+00> : vector<4x8xf32>
    %29 = vector.multi_reduction <add>, %28, %cst_13 [2] : vector<4x8x8xf32> to vector<4x8xf32>
    %30 = vector.shape_cast %29 : vector<4x8xf32> to vector<4x8x1xf32>
    %31 = tpu.reciprocal %30 {approx = true} : vector<4x8x1xf32> -> vector<4x8x1xf32>
    %32 = vector.broadcast %31 : vector<4x8x1xf32> to vector<4x8x8xf32>
    %33 = arith.mulf %28, %32 : vector<4x8x8xf32>
    %cst_14 = arith.constant dense<0.000000e+00> : vector<4x8x8xf32>
    %34 = tpu.matmul %33, %19, %cst_14 {dimension_numbers = #tpu.dot_dimension_numbers<[2], [1], [1], [2], [0, 0, 0, 1, 1, 2], [0], [0]>} : vector<4x8x8xf32>, vector<4x8x8xf32>, vector<4x8x8xf32> -> vector<4x8x8xf32>
    %35 = vector.extract_strided_slice %13 {offsets = [0, 8, 0], sizes = [4, 8, 8], strides = [1, 1, 1]} : vector<4x16x8xf32> to vector<4x8x8xf32>
    %36 = vector.extract_strided_slice %14 {offsets = [0, 8, 0], sizes = [4, 8, 8], strides = [1, 1, 1]} : vector<4x16x8xf32> to vector<4x8x8xf32>
    %37 = vector.extract_strided_slice %15 {offsets = [0, 8, 0], sizes = [4, 8, 8], strides = [1, 1, 1]} : vector<4x16x8xf32> to vector<4x8x8xf32>
    %cst_15 = arith.constant dense<0.000000e+00> : vector<4x8x8xf32>
    %38 = tpu.matmul %35, %36, %cst_15 {dimension_numbers = #tpu.dot_dimension_numbers<[2], [2], [1], [1], [0, 0, 0, 1, 1, 1], [0], [0]>} : vector<4x8x8xf32>, vector<4x8x8xf32>, vector<4x8x8xf32> -> vector<4x8x8xf32>
    %39 = vector.shape_cast %7 : vector<8x8xf32> to vector<1x8x8xf32>
    %40 = vector.broadcast %39 : vector<1x8x8xf32> to vector<4x8x8xf32>
    %41 = arith.addf %38, %40 : vector<4x8x8xf32>
    %cst_16 = arith.constant dense<0xFF800000> : vector<4x8xf32>
    %42 = vector.multi_reduction <maximumf>, %41, %cst_16 [2] : vector<4x8x8xf32> to vector<4x8xf32>
    %43 = vector.shape_cast %42 : vector<4x8xf32> to vector<4x8x1xf32>
    %44 = vector.broadcast %43 : vector<4x8x1xf32> to vector<4x8x8xf32>
    %45 = arith.subf %41, %44 : vector<4x8x8xf32>
    %46 = math.exp %45 : vector<4x8x8xf32>
    %cst_17 = arith.constant dense<0.000000e+00> : vector<4x8xf32>
    %47 = vector.multi_reduction <add>, %46, %cst_17 [2] : vector<4x8x8xf32> to vector<4x8xf32>
    %48 = vector.shape_cast %47 : vector<4x8xf32> to vector<4x8x1xf32>
    %49 = tpu.reciprocal %48 {approx = true} : vector<4x8x1xf32> -> vector<4x8x1xf32>
    %50 = vector.broadcast %49 : vector<4x8x1xf32> to vector<4x8x8xf32>
    %51 = arith.mulf %46, %50 : vector<4x8x8xf32>
    %cst_18 = arith.constant dense<0.000000e+00> : vector<4x8x8xf32>
    %52 = tpu.matmul %51, %37, %cst_18 {dimension_numbers = #tpu.dot_dimension_numbers<[2], [1], [1], [2], [0, 0, 0, 1, 1, 2], [0], [0]>} : vector<4x8x8xf32>, vector<4x8x8xf32>, vector<4x8x8xf32> -> vector<4x8x8xf32>
    %53 = tpu.concatenate %34, %52 in 1 : vector<4x8x8xf32>, vector<4x8x8xf32> -> vector<4x16x8xf32>
    %cst_19 = arith.constant dense<0.000000e+00> : vector<4x16x32xf32>
    %54 = tpu.matmul %53, %16, %cst_19 {dimension_numbers = #tpu.dot_dimension_numbers<[2], [1], [1], [2], [0, 0, 0, 1, 1, 2], [0], [0]>} : vector<4x16x8xf32>, vector<4x8x32xf32>, vector<4x16x32xf32> -> vector<4x16x32xf32>
    %cst_20 = arith.constant dense<0.000000e+00> : vector<16x32xf32>
    %55 = vector.multi_reduction <add>, %54, %cst_20 [0] : vector<4x16x32xf32> to vector<16x32xf32>
    %56 = arith.addf %0, %55 : vector<16x32xf32>
    %c0_21 = arith.constant 0 : index
    %c0_22 = arith.constant 0 : index
    %57 = vector.load %arg9[%c0_21, %c0_22] : memref<1x32xf32, #tpu.memory_space<vmem>>, vector<1x32xf32>
    %c0_23 = arith.constant 0 : index
    %c0_24 = arith.constant 0 : index
    %58 = vector.load %arg10[%c0_23, %c0_24] : memref<1x32xf32, #tpu.memory_space<vmem>>, vector<1x32xf32>
    %cst_25 = arith.constant dense<0.000000e+00> : vector<16xf32>
    %59 = vector.multi_reduction <add>, %56, %cst_25 [1] : vector<16x32xf32> to vector<16xf32>
    %60 = vector.shape_cast %59 : vector<16xf32> to vector<16x1xf32>
    %cst_26 = arith.constant 3.200000e+01 : f32
    %61 = vector.broadcast %cst_26 : f32 to vector<16x1xf32>
    %62 = arith.divf %60, %61 : vector<16x1xf32>
    %63 = vector.broadcast %62 : vector<16x1xf32> to vector<16x32xf32>
    %64 = arith.subf %56, %63 : vector<16x32xf32>
    %65 = arith.mulf %64, %64 : vector<16x32xf32>
    %cst_27 = arith.constant dense<0.000000e+00> : vector<16xf32>
    %66 = vector.multi_reduction <add>, %65, %cst_27 [1] : vector<16x32xf32> to vector<16xf32>
    %67 = vector.shape_cast %66 : vector<16xf32> to vector<16x1xf32>
    %cst_28 = arith.constant 3.200000e+01 : f32
    %68 = vector.broadcast %cst_28 : f32 to vector<16x1xf32>
    %69 = arith.divf %67, %68 : vector<16x1xf32>
    %70 = vector.broadcast %62 : vector<16x1xf32> to vector<16x32xf32>
    %71 = arith.subf %56, %70 : vector<16x32xf32>
    %cst_29 = arith.constant 9.99999974E-6 : f32
    %72 = vector.broadcast %cst_29 : f32 to vector<16x1xf32>
    %73 = arith.addf %69, %72 : vector<16x1xf32>
    %74 = math.rsqrt %73 : vector<16x1xf32>
    %75 = vector.broadcast %74 : vector<16x1xf32> to vector<16x32xf32>
    %76 = arith.mulf %71, %75 : vector<16x32xf32>
    %77 = vector.broadcast %57 : vector<1x32xf32> to vector<16x32xf32>
    %78 = arith.mulf %76, %77 : vector<16x32xf32>
    %79 = vector.broadcast %58 : vector<1x32xf32> to vector<16x32xf32>
    %80 = arith.addf %78, %79 : vector<16x32xf32>
    %c0_30 = arith.constant 0 : index
    %c0_31 = arith.constant 0 : index
    %c0_32 = arith.constant 0 : index
    %81 = vector.load %arg6[%c0_30, %c0_31, %c0_32] : memref<4x32x8xf32, #tpu.memory_space<vmem>>, vector<4x32x8xf32>
    %82 = vector.shape_cast %80 : vector<16x32xf32> to vector<1x16x32xf32>
    %83 = vector.shape_cast %82 : vector<1x16x32xf32> to vector<1x16x32xf32>
    %84 = vector.broadcast %83 : vector<1x16x32xf32> to vector<4x16x32xf32>
    %cst_33 = arith.constant dense<0.000000e+00> : vector<4x16x8xf32>
    %85 = tpu.matmul %84, %81, %cst_33 {dimension_numbers = #tpu.dot_dimension_numbers<[2], [1], [1], [2], [0, 0, 0, 1, 1, 2], [0], [0]>} : vector<4x16x32xf32>, vector<4x32x8xf32>, vector<4x16x8xf32> -> vector<4x16x8xf32>
    %c0_34 = arith.constant 0 : index
    %c0_35 = arith.constant 0 : index
    %c0_36 = arith.constant 0 : index
    %86 = vector.load %arg7[%c0_34, %c0_35, %c0_36] : memref<4x32x16xf32, #tpu.memory_space<vmem>>, vector<4x32x16xf32>
    %87 = vector.shape_cast %1 : vector<16x32xf32> to vector<1x16x32xf32>
    %88 = vector.shape_cast %87 : vector<1x16x32xf32> to vector<1x16x32xf32>
    %89 = vector.broadcast %88 : vector<1x16x32xf32> to vector<4x16x32xf32>
    %cst_37 = arith.constant dense<0.000000e+00> : vector<4x16x16xf32>
    %90 = tpu.matmul %89, %86, %cst_37 {dimension_numbers = #tpu.dot_dimension_numbers<[2], [1], [1], [2], [0, 0, 0, 1, 1, 2], [0], [0]>} : vector<4x16x32xf32>, vector<4x32x16xf32>, vector<4x16x16xf32> -> vector<4x16x16xf32>
    %91 = vector.extract_strided_slice %90 {offsets = [0, 0, 0], sizes = [4, 16, 8], strides = [1, 1, 1]} : vector<4x16x16xf32> to vector<4x16x8xf32>
    %92 = vector.extract_strided_slice %90 {offsets = [0, 0, 8], sizes = [4, 16, 8], strides = [1, 1, 1]} : vector<4x16x16xf32> to vector<4x16x8xf32>
    %c0_38 = arith.constant 0 : index
    %c0_39 = arith.constant 0 : index
    %c0_40 = arith.constant 0 : index
    %93 = vector.load %arg8[%c0_38, %c0_39, %c0_40] : memref<4x8x32xf32, #tpu.memory_space<vmem>>, vector<4x8x32xf32>
    %94 = vector.extract_strided_slice %85 {offsets = [0, 0, 0], sizes = [4, 8, 8], strides = [1, 1, 1]} : vector<4x16x8xf32> to vector<4x8x8xf32>
    %95 = vector.extract_strided_slice %91 {offsets = [0, 0, 0], sizes = [4, 8, 8], strides = [1, 1, 1]} : vector<4x16x8xf32> to vector<4x8x8xf32>
    %96 = vector.extract_strided_slice %92 {offsets = [0, 0, 0], sizes = [4, 8, 8], strides = [1, 1, 1]} : vector<4x16x8xf32> to vector<4x8x8xf32>
    %c0_41 = arith.constant 0 : index
    %97 = memref.load %arg1[%c0_41] : memref<2xi32, #tpu.memory_space<smem>>
    %98 = tpu.iota {dimensions = array<i32: 1>} : vector<1x8xi32>
    %99 = vector.broadcast %97 : i32 to vector<1x8xi32>
    %100 = arith.cmpi slt, %98, %99 : vector<1x8xi32>
    %cst_42 = arith.constant 0.000000e+00 : f32
    %cst_43 = arith.constant -1.000000e+06 : f32
    %101 = vector.broadcast %cst_42 : f32 to vector<1x8xf32>
    %102 = vector.broadcast %cst_43 : f32 to vector<1x8xf32>
    %103 = arith.select %100, %101, %102 : vector<1x8xi1>, vector<1x8xf32>
    %cst_44 = arith.constant dense<0.000000e+00> : vector<4x8x8xf32>
    %104 = tpu.matmul %94, %95, %cst_44 {dimension_numbers = #tpu.dot_dimension_numbers<[2], [2], [1], [1], [0, 0, 0, 1, 1, 1], [0], [0]>} : vector<4x8x8xf32>, vector<4x8x8xf32>, vector<4x8x8xf32> -> vector<4x8x8xf32>
    %105 = vector.shape_cast %103 : vector<1x8xf32> to vector<1x1x8xf32>
    %106 = vector.broadcast %105 : vector<1x1x8xf32> to vector<4x8x8xf32>
    %107 = arith.addf %104, %106 : vector<4x8x8xf32>
    %cst_45 = arith.constant dense<0xFF800000> : vector<4x8xf32>
    %108 = vector.multi_reduction <maximumf>, %107, %cst_45 [2] : vector<4x8x8xf32> to vector<4x8xf32>
    %109 = vector.shape_cast %108 : vector<4x8xf32> to vector<4x8x1xf32>
    %110 = vector.broadcast %109 : vector<4x8x1xf32> to vector<4x8x8xf32>
    %111 = arith.subf %107, %110 : vector<4x8x8xf32>
    %112 = math.exp %111 : vector<4x8x8xf32>
    %cst_46 = arith.constant dense<0.000000e+00> : vector<4x8xf32>
    %113 = vector.multi_reduction <add>, %112, %cst_46 [2] : vector<4x8x8xf32> to vector<4x8xf32>
    %114 = vector.shape_cast %113 : vector<4x8xf32> to vector<4x8x1xf32>
    %115 = tpu.reciprocal %114 {approx = true} : vector<4x8x1xf32> -> vector<4x8x1xf32>
    %116 = vector.broadcast %115 : vector<4x8x1xf32> to vector<4x8x8xf32>
    %117 = arith.mulf %112, %116 : vector<4x8x8xf32>
    %cst_47 = arith.constant dense<0.000000e+00> : vector<4x8x8xf32>
    %118 = tpu.matmul %117, %96, %cst_47 {dimension_numbers = #tpu.dot_dimension_numbers<[2], [1], [1], [2], [0, 0, 0, 1, 1, 2], [0], [0]>} : vector<4x8x8xf32>, vector<4x8x8xf32>, vector<4x8x8xf32> -> vector<4x8x8xf32>
    %119 = vector.extract_strided_slice %85 {offsets = [0, 8, 0], sizes = [4, 8, 8], strides = [1, 1, 1]} : vector<4x16x8xf32> to vector<4x8x8xf32>
    %120 = vector.extract_strided_slice %91 {offsets = [0, 8, 0], sizes = [4, 8, 8], strides = [1, 1, 1]} : vector<4x16x8xf32> to vector<4x8x8xf32>
    %121 = vector.extract_strided_slice %92 {offsets = [0, 8, 0], sizes = [4, 8, 8], strides = [1, 1, 1]} : vector<4x16x8xf32> to vector<4x8x8xf32>
    %c1 = arith.constant 1 : index
    %122 = memref.load %arg1[%c1] : memref<2xi32, #tpu.memory_space<smem>>
    %123 = tpu.iota {dimensions = array<i32: 1>} : vector<1x8xi32>
    %124 = vector.broadcast %122 : i32 to vector<1x8xi32>
    %125 = arith.cmpi slt, %123, %124 : vector<1x8xi32>
    %cst_48 = arith.constant 0.000000e+00 : f32
    %cst_49 = arith.constant -1.000000e+06 : f32
    %126 = vector.broadcast %cst_48 : f32 to vector<1x8xf32>
    %127 = vector.broadcast %cst_49 : f32 to vector<1x8xf32>
    %128 = arith.select %125, %126, %127 : vector<1x8xi1>, vector<1x8xf32>
    %cst_50 = arith.constant dense<0.000000e+00> : vector<4x8x8xf32>
    %129 = tpu.matmul %119, %120, %cst_50 {dimension_numbers = #tpu.dot_dimension_numbers<[2], [2], [1], [1], [0, 0, 0, 1, 1, 1], [0], [0]>} : vector<4x8x8xf32>, vector<4x8x8xf32>, vector<4x8x8xf32> -> vector<4x8x8xf32>
    %130 = vector.shape_cast %128 : vector<1x8xf32> to vector<1x1x8xf32>
    %131 = vector.broadcast %130 : vector<1x1x8xf32> to vector<4x8x8xf32>
    %132 = arith.addf %129, %131 : vector<4x8x8xf32>
    %cst_51 = arith.constant dense<0xFF800000> : vector<4x8xf32>
    %133 = vector.multi_reduction <maximumf>, %132, %cst_51 [2] : vector<4x8x8xf32> to vector<4x8xf32>
    %134 = vector.shape_cast %133 : vector<4x8xf32> to vector<4x8x1xf32>
    %135 = vector.broadcast %134 : vector<4x8x1xf32> to vector<4x8x8xf32>
    %136 = arith.subf %132, %135 : vector<4x8x8xf32>
    %137 = math.exp %136 : vector<4x8x8xf32>
    %cst_52 = arith.constant dense<0.000000e+00> : vector<4x8xf32>
    %138 = vector.multi_reduction <add>, %137, %cst_52 [2] : vector<4x8x8xf32> to vector<4x8xf32>
    %139 = vector.shape_cast %138 : vector<4x8xf32> to vector<4x8x1xf32>
    %140 = tpu.reciprocal %139 {approx = true} : vector<4x8x1xf32> -> vector<4x8x1xf32>
    %141 = vector.broadcast %140 : vector<4x8x1xf32> to vector<4x8x8xf32>
    %142 = arith.mulf %137, %141 : vector<4x8x8xf32>
    %cst_53 = arith.constant dense<0.000000e+00> : vector<4x8x8xf32>
    %143 = tpu.matmul %142, %121, %cst_53 {dimension_numbers = #tpu.dot_dimension_numbers<[2], [1], [1], [2], [0, 0, 0, 1, 1, 2], [0], [0]>} : vector<4x8x8xf32>, vector<4x8x8xf32>, vector<4x8x8xf32> -> vector<4x8x8xf32>
    %144 = tpu.concatenate %118, %143 in 1 : vector<4x8x8xf32>, vector<4x8x8xf32> -> vector<4x16x8xf32>
    %cst_54 = arith.constant dense<0.000000e+00> : vector<4x16x32xf32>
    %145 = tpu.matmul %144, %93, %cst_54 {dimension_numbers = #tpu.dot_dimension_numbers<[2], [1], [1], [2], [0, 0, 0, 1, 1, 2], [0], [0]>} : vector<4x16x8xf32>, vector<4x8x32xf32>, vector<4x16x32xf32> -> vector<4x16x32xf32>
    %cst_55 = arith.constant dense<0.000000e+00> : vector<16x32xf32>
    %146 = vector.multi_reduction <add>, %145, %cst_55 [0] : vector<4x16x32xf32> to vector<16x32xf32>
    %147 = arith.addf %80, %146 : vector<16x32xf32>
    %c0_56 = arith.constant 0 : index
    %c0_57 = arith.constant 0 : index
    %148 = vector.load %arg11[%c0_56, %c0_57] : memref<1x32xf32, #tpu.memory_space<vmem>>, vector<1x32xf32>
    %c0_58 = arith.constant 0 : index
    %c0_59 = arith.constant 0 : index
    %149 = vector.load %arg12[%c0_58, %c0_59] : memref<1x32xf32, #tpu.memory_space<vmem>>, vector<1x32xf32>
    %cst_60 = arith.constant dense<0.000000e+00> : vector<16xf32>
    %150 = vector.multi_reduction <add>, %147, %cst_60 [1] : vector<16x32xf32> to vector<16xf32>
    %151 = vector.shape_cast %150 : vector<16xf32> to vector<16x1xf32>
    %cst_61 = arith.constant 3.200000e+01 : f32
    %152 = vector.broadcast %cst_61 : f32 to vector<16x1xf32>
    %153 = arith.divf %151, %152 : vector<16x1xf32>
    %154 = vector.broadcast %153 : vector<16x1xf32> to vector<16x32xf32>
    %155 = arith.subf %147, %154 : vector<16x32xf32>
    %156 = arith.mulf %155, %155 : vector<16x32xf32>
    %cst_62 = arith.constant dense<0.000000e+00> : vector<16xf32>
    %157 = vector.multi_reduction <add>, %156, %cst_62 [1] : vector<16x32xf32> to vector<16xf32>
    %158 = vector.shape_cast %157 : vector<16xf32> to vector<16x1xf32>
    %cst_63 = arith.constant 3.200000e+01 : f32
    %159 = vector.broadcast %cst_63 : f32 to vector<16x1xf32>
    %160 = arith.divf %158, %159 : vector<16x1xf32>
    %161 = vector.broadcast %153 : vector<16x1xf32> to vector<16x32xf32>
    %162 = arith.subf %147, %161 : vector<16x32xf32>
    %cst_64 = arith.constant 9.99999974E-6 : f32
    %163 = vector.broadcast %cst_64 : f32 to vector<16x1xf32>
    %164 = arith.addf %160, %163 : vector<16x1xf32>
    %165 = math.rsqrt %164 : vector<16x1xf32>
    %166 = vector.broadcast %165 : vector<16x1xf32> to vector<16x32xf32>
    %167 = arith.mulf %162, %166 : vector<16x32xf32>
    %168 = vector.broadcast %148 : vector<1x32xf32> to vector<16x32xf32>
    %169 = arith.mulf %167, %168 : vector<16x32xf32>
    %170 = vector.broadcast %149 : vector<1x32xf32> to vector<16x32xf32>
    %171 = arith.addf %169, %170 : vector<16x32xf32>
    %c0_65 = arith.constant 0 : index
    %c0_66 = arith.constant 0 : index
    %172 = vector.load %arg15[%c0_65, %c0_66] : memref<32x64xf32, #tpu.memory_space<vmem>>, vector<32x64xf32>
    %cst_67 = arith.constant dense<0.000000e+00> : vector<16x64xf32>
    %173 = tpu.matmul %171, %172, %cst_67 {dimension_numbers = #tpu.dot_dimension_numbers<[1], [0], [0], [1], [0, 0, 1, 1], [], []>} : vector<16x32xf32>, vector<32x64xf32>, vector<16x64xf32> -> vector<16x64xf32>
    %c0_68 = arith.constant 0 : index
    %c0_69 = arith.constant 0 : index
    %174 = vector.load %arg16[%c0_68, %c0_69] : memref<1x64xf32, #tpu.memory_space<vmem>>, vector<1x64xf32>
    %175 = vector.broadcast %174 : vector<1x64xf32> to vector<16x64xf32>
    %176 = arith.addf %173, %175 : vector<16x64xf32>
    %cst_70 = arith.constant 0.000000e+00 : f32
    %177 = vector.broadcast %cst_70 : f32 to vector<16x64xf32>
    %178 = arith.maximumf %176, %177 : vector<16x64xf32>
    %c0_71 = arith.constant 0 : index
    %c0_72 = arith.constant 0 : index
    %179 = vector.load %arg17[%c0_71, %c0_72] : memref<64x32xf32, #tpu.memory_space<vmem>>, vector<64x32xf32>
    %cst_73 = arith.constant dense<0.000000e+00> : vector<16x32xf32>
    %180 = tpu.matmul %178, %179, %cst_73 {dimension_numbers = #tpu.dot_dimension_numbers<[1], [0], [0], [1], [0, 0, 1, 1], [], []>} : vector<16x64xf32>, vector<64x32xf32>, vector<16x32xf32> -> vector<16x32xf32>
    %c0_74 = arith.constant 0 : index
    %c0_75 = arith.constant 0 : index
    %181 = vector.load %arg18[%c0_74, %c0_75] : memref<1x32xf32, #tpu.memory_space<vmem>>, vector<1x32xf32>
    %182 = vector.broadcast %181 : vector<1x32xf32> to vector<16x32xf32>
    %183 = arith.addf %180, %182 : vector<16x32xf32>
    %184 = arith.addf %171, %183 : vector<16x32xf32>
    %c0_76 = arith.constant 0 : index
    %c0_77 = arith.constant 0 : index
    %185 = vector.load %arg13[%c0_76, %c0_77] : memref<1x32xf32, #tpu.memory_space<vmem>>, vector<1x32xf32>
    %c0_78 = arith.constant 0 : index
    %c0_79 = arith.constant 0 : index
    %186 = vector.load %arg14[%c0_78, %c0_79] : memref<1x32xf32, #tpu.memory_space<vmem>>, vector<1x32xf32>
    %cst_80 = arith.constant dense<0.000000e+00> : vector<16xf32>
    %187 = vector.multi_reduction <add>, %184, %cst_80 [1] : vector<16x32xf32> to vector<16xf32>
    %188 = vector.shape_cast %187 : vector<16xf32> to vector<16x1xf32>
    %cst_81 = arith.constant 3.200000e+01 : f32
    %189 = vector.broadcast %cst_81 : f32 to vector<16x1xf32>
    %190 = arith.divf %188, %189 : vector<16x1xf32>
    %191 = vector.broadcast %190 : vector<16x1xf32> to vector<16x32xf32>
    %192 = arith.subf %184, %191 : vector<16x32xf32>
    %193 = arith.mulf %192, %192 : vector<16x32xf32>
    %cst_82 = arith.constant dense<0.000000e+00> : vector<16xf32>
    %194 = vector.multi_reduction <add>, %193, %cst_82 [1] : vector<16x32xf32> to vector<16xf32>
    %195 = vector.shape_cast %194 : vector<16xf32> to vector<16x1xf32>
    %cst_83 = arith.constant 3.200000e+01 : f32
    %196 = vector.broadcast %cst_83 : f32 to vector<16x1xf32>
    %197 = arith.divf %195, %196 : vector<16x1xf32>
    %198 = vector.broadcast %190 : vector<16x1xf32> to vector<16x32xf32>
    %199 = arith.subf %184, %198 : vector<16x32xf32>
    %cst_84 = arith.constant 9.99999974E-6 : f32
    %200 = vector.broadcast %cst_84 : f32 to vector<16x1xf32>
    %201 = arith.addf %197, %200 : vector<16x1xf32>
    %202 = math.rsqrt %201 : vector<16x1xf32>
    %203 = vector.broadcast %202 : vector<16x1xf32> to vector<16x32xf32>
    %204 = arith.mulf %199, %203 : vector<16x32xf32>
    %205 = vector.broadcast %185 : vector<1x32xf32> to vector<16x32xf32>
    %206 = arith.mulf %204, %205 : vector<16x32xf32>
    %207 = vector.broadcast %186 : vector<1x32xf32> to vector<16x32xf32>
    %208 = arith.addf %206, %207 : vector<16x32xf32>
    %c0_85 = arith.constant 0 : index
    %c0_86 = arith.constant 0 : index
    %209 = vector.load %arg19[%c0_85, %c0_86] : memref<16x32xf32, #tpu.memory_space<vmem>>, vector<16x32xf32>
    tpu.vector_store %arg19[%c0_85, %c0_86], %208 {strides = array<i32>} : memref<16x32xf32, #tpu.memory_space<vmem>>, vector<16x32xf32>,
    return
  }
  func.func @transform_0(%arg0: i32, %arg1: memref<2xi32, #tpu.memory_space<smem>>) -> (i32, i32) {
    %c0_i32 = arith.constant 0 : i32
    %c0_i32_0 = arith.constant 0 : i32
    %c0_i32_1 = arith.constant 0 : i32
    return %c0_i32, %c0_i32_0 : i32, i32
  }
  func.func @transform_1(%arg0: i32, %arg1: memref<2xi32, #tpu.memory_space<smem>>) -> (i32, i32) {
    %c0_i32 = arith.constant 0 : i32
    %c0_i32_0 = arith.constant 0 : i32
    %c0_i32_1 = arith.constant 0 : i32
    return %c0_i32, %c0_i32_0 : i32, i32
  }
  func.func @transform_2(%arg0: i32, %arg1: memref<2xi32, #tpu.memory_space<smem>>) -> (i32, i32, i32) {
    %c0_i32 = arith.constant 0 : i32
    %c0_i32_0 = arith.constant 0 : i32
    %c0_i32_1 = arith.constant 0 : i32
    %c0_i32_2 = arith.constant 0 : i32
    return %c0_i32, %c0_i32_0, %c0_i32_1 : i32, i32, i32
  }
  func.func @transform_3(%arg0: i32, %arg1: memref<2xi32, #tpu.memory_space<smem>>) -> (i32, i32, i32) {
    %c0_i32 = arith.constant 0 : i32
    %c0_i32_0 = arith.constant 0 : i32
    %c0_i32_1 = arith.constant 0 : i32
    %c0_i32_2 = arith.constant 0 : i32
    return %c0_i32, %c0_i32_0, %c0_i32_1 : i32, i32, i32
  }
  func.func @transform_4(%arg0: i32, %arg1: memref<2xi32, #tpu.memory_space<smem>>) -> (i32, i32, i32) {
    %c0_i32 = arith.constant 0 : i32
    %c0_i32_0 = arith.constant 0 : i32
    %c0_i32_1 = arith.constant 0 : i32
    %c0_i32_2 = arith.constant 0 : i32
    return %c0_i32, %c0_i32_0, %c0_i32_1 : i32, i32, i32
  }
  func.func @transform_5(%arg0: i32, %arg1: memref<2xi32, #tpu.memory_space<smem>>) -> (i32, i32, i32) {
    %c0_i32 = arith.constant 0 : i32
    %c0_i32_0 = arith.constant 0 : i32
    %c0_i32_1 = arith.constant 0 : i32
    %c0_i32_2 = arith.constant 0 : i32
    return %c0_i32, %c0_i32_0, %c0_i32_1 : i32, i32, i32
  }
  func.func @transform_6(%arg0: i32, %arg1: memref<2xi32, #tpu.memory_space<smem>>) -> (i32, i32, i32) {
    %c0_i32 = arith.constant 0 : i32
    %c0_i32_0 = arith.constant 0 : i32
    %c0_i32_1 = arith.constant 0 : i32
    %c0_i32_2 = arith.constant 0 : i32
    return %c0_i32, %c0_i32_0, %c0_i32_1 : i32, i32, i32
  }
  func.func @transform_7(%arg0: i32, %arg1: memref<2xi32, #tpu.memory_space<smem>>) -> (i32, i32) {
    %c0_i32 = arith.constant 0 : i32
    %c0_i32_0 = arith.constant 0 : i32
    %c0_i32_1 = arith.constant 0 : i32
    return %c0_i32, %c0_i32_0 : i32, i32
  }
  func.func @transform_8(%arg0: i32, %arg1: memref<2xi32, #tpu.memory_space<smem>>) -> (i32, i32) {
    %c0_i32 = arith.constant 0 : i32
    %c0_i32_0 = arith.constant 0 : i32
    %c0_i32_1 = arith.constant 0 : i32
    return %c0_i32, %c0_i32_0 : i32, i32
  }
  func.func @transform_9(%arg0: i32, %arg1: memref<2xi32, #tpu.memory_space<smem>>) -> (i32, i32) {
    %c0_i32 = arith.constant 0 : i32
    %c0_i32_0 = arith.constant 0 : i32
    %c0_i32_1 = arith.constant 0 : i32
    return %c0_i32, %c0_i32_0 : i32, i32
  }
  func.func @transform_10(%arg0: i32, %arg1: memref<2xi32, #tpu.memory_space<smem>>) -> (i32, i32) {
    %c0_i32 = arith.constant 0 : i32
    %c0_i32_0 = arith.constant 0 : i32
    %c0_i32_1 = arith.constant 0 : i32
    return %c0_i32, %c0_i32_0 : i32, i32
  }
  func.func @transform_11(%arg0: i32, %arg1: memref<2xi32, #tpu.memory_space<smem>>) -> (i32, i32) {
    %c0_i32 = arith.constant 0 : i32
    %c0_i32_0 = arith.constant 0 : i32
    %c0_i32_1 = arith.constant 0 : i32
    return %c0_i32, %c0_i32_0 : i32, i32
  }
  func.func @transform_12(%arg0: i32, %arg1: memref<2xi32, #tpu.memory_space<smem>>) -> (i32, i32) {
    %c0_i32 = arith.constant 0 : i32
    %c0_i32_0 = arith.constant 0 : i32
    %c0_i32_1 = arith.constant 0 : i32
    return %c0_i32, %c0_i32_0 : i32, i32
  }
  func.func @transform_13(%arg0: i32, %arg1: memref<2xi32, #tpu.memory_space<smem>>) -> (i32, i32) {
    %c0_i32 = arith.constant 0 : i32
    %c0_i32_0 = arith.constant 0 : i32
    %c0_i32_1 = arith.constant 0 : i32
    return %c0_i32, %c0_i32_0 : i32, i32
  }
  func.func @transform_14(%arg0: i32, %arg1: memref<2xi32, #tpu.memory_space<smem>>) -> (i32, i32) {
    %c0_i32 = arith.constant 0 : i32
    %c0_i32_0 = arith.constant 0 : i32
    %c0_i32_1 = arith.constant 0 : i32
    return %c0_i32, %c0_i32_0 : i32, i32
  }
  func.func @transform_15(%arg0: i32, %arg1: memref<2xi32, #tpu.memory_space<smem>>) -> (i32, i32) {
    %c0_i32 = arith.constant 0 : i32
    %c0_i32_0 = arith.constant 0 : i32
    %c0_i32_1 = arith.constant 0 : i32
    return %c0_i32, %c0_i32_0 : i32, i32
  }
  func.func @transform_16(%arg0: i32, %arg1: memref<2xi32, #tpu.memory_space<smem>>) -> (i32, i32) {
    %c0_i32 = arith.constant 0 : i32
    %c0_i32_0 = arith.constant 0 : i32
    %c0_i32_1 = arith.constant 0 : i32
    return %c0_i32, %c0_i32_0 : i32, i32
  }
  func.func @transform_17(%arg0: i32, %arg1: memref<2xi32, #tpu.memory_space<smem>>) -> (i32, i32) {
    %c0_i32 = arith.constant 0 : i32
    %c0_i32_0 = arith.constant 0 : i32
    %c0_i32_1 = arith.constant 0 : i32
    return %c0_i32, %c0_i32_0 : i32, i32
  }
}

</mosaic_0001>

<bundles_post_ra>
// kernel: tpu_custom_call.1
= control target key start
LH: loop header
LB: loop body
LE: loop exit
PB: predicated region body
PF: predicated region fallthrough
CT: control target
= control target key end

     0   :  { %s6210_s0 = inlined_call_operand.vmem [shape: s32[2], index: 0, kind: input, shape index: {}]   ;;  %s6211_s1 = inlined_call_operand.vmem [shape: f32[16,32], index: 1, kind: input, shape index: {}]   ;;  %s6212_s2 = inlined_call_operand.vmem [shape: f32[16,32], index: 2, kind: input, shape index: {}]   ;;  %s6213_s3 = inlined_call_operand.vmem [shape: f32[4,32,24], index: 3, kind: input, shape index: {}]   ;;  %s6214_s4 = inlined_call_operand.vmem [shape: f32[4,8,32], index: 4, kind: input, shape index: {}]   ;;  %s6215_s5 = inlined_call_operand.vmem [shape: f32[4,32,8], index: 5, kind: input, shape index: {}]   ;;  %s6216_s6 = inlined_call_operand.vmem [shape: f32[4,32,16], index: 6, kind: input, shape index: {}]   ;;  %s6217_s7 = inlined_call_operand.vmem [shape: f32[4,8,32], index: 7, kind: input, shape index: {}]   ;;  %s6218_s8 = inlined_call_operand.vmem [shape: f32[1,32], index: 8, kind: input, shape index: {}]   ;;  %s6219_s9 = inlined_call_operand.vmem [shape: f32[1,32], index: 9, kind: input, shape index: {}]   ;;  %s6220_s10 = inlined_call_operand.vmem [shape: f32[1,32], index: 10, kind: input, shape index: {}]   ;;  %s6221_s11 = inlined_call_operand.vmem [shape: f32[1,32], index: 11, kind: input, shape index: {}]   ;;  %s6222_s12 = inlined_call_operand.vmem [shape: f32[1,32], index: 12, kind: input, shape index: {}]   ;;  %s6223_s13 = inlined_call_operand.vmem [shape: f32[1,32], index: 13, kind: input, shape index: {}]   ;;  %s6224_s14 = inlined_call_operand.vmem [shape: f32[32,64], index: 14, kind: input, shape index: {}]   ;;  %s6225_s15 = inlined_call_operand.vmem [shape: f32[1,64], index: 15, kind: input, shape index: {}]   ;;  %s6226_s16 = inlined_call_operand.vmem [shape: f32[64,32], index: 16, kind: input, shape index: {}]   ;;  %s6227_s17 = inlined_call_operand.vmem [shape: f32[1,32], index: 17, kind: input, shape index: {}]   ;;  %s6228_s18 = inlined_call_operand.hbm [shape: f32[16,32], index: 18, kind: output, shape index: {}]  }
   0x1   :  { %6231 = sst [smem:[#allocation8_spill]] %s6210_s0 }
   0x2   :  { %6232 = sst [smem:[#allocation9_spill]] %s6211_s1 }
   0x3   :  { %6233 = sst [smem:[#allocation10_spill]] %s6212_s2 }
   0x4   :  { %6234 = sst [smem:[#allocation11_spill]] %s6222_s12 }
   0x5   :  { %s6235_s29 = sld [smem:[#allocation8_spill]] }
   0xb   :  { %s23_s12 = sshll.u32 %s6235_s29, 4  ;;  %s24_s12 = int_to_ptr.vmem [resolvable:$true] %s23_s12 }
   0xc   :  { %s5422_s30 = scalar_lea.vmem %s24_s12, 16  ;;  %p5427_p1 = scmp.lt.s32.totalorder %s24_s12, %s24_s12 }
   0xd   :  { %p5423_p0 = scmp.ne.s32.totalorder %s24_s12, %s5422_s30  ;;  %p5428_p2 = scmp.lt.s32.totalorder %s5422_s30, %s5422_s30 }
   0xf   :  { %p5429_p3 = por %p5428_p2, %p5427_p1 }
  0x11   :  { %p5430_p4 = pnand %p5429_p3, %p5423_p0 }
  0x13   :  { %5433 = shalt.err (!%p5430_p4)  }
  0x14   :  { %s5458_s0 = smov [#allocation3]  }
  0x15   :  { %26 = dma.vmem_to_smem %s24_s12, 16, %s5458_s0, [#allocation2] }
  0x16   :  { %5454 = dma.done.wait [#allocation2], 16 }
  0x17   :  { %5455 = vsyncadd [#allocation2], 4294967280 }
  0x18   :  { %28 = sfence }
  0x19   :  { %v77_v0 = vld [vmem:[%s6213_s3 + $0x18] sm:$0xff]  ;;  %v76_v1 = vld [vmem:[%s6213_s3 + $0x10] sm:$0xff]  ;;  %v75_v4 = vld [vmem:[%s6213_s3 + $0x8] sm:$0xff]  ;;  %s6236_s30 = sld [smem:[#allocation9_spill]]  ;;  %vm90_vm0 = vcmask 261120  }
  0x1a   :  { %v81_v2 = vld [vmem:[%s6213_s3 + $0x38] sm:$0xff]  ;;  %4975 = vmatprep.subr.mxu0 %v77_v0  ;;  %v80_v3 = vld [vmem:[%s6213_s3 + $0x30] sm:$0xff]  ;;  %v79_v5 = vld [vmem:[%s6213_s3 + $0x28] sm:$0xff] }
  0x1b   :  { %4986 = vmatprep.subr.mxu1 %v81_v2  ;;  %4976 = vmatpush3.msra.mxu0 %v77_v0  ;;  %v74_v7 = vld [vmem:[%s6213_s3] sm:$0xff]  ;;  %v85_v10 = vld [vmem:[%s6213_s3 + $0x58] sm:$0xff] }
  0x1c   :  { %4987 = vmatpush3.msra.mxu1 %v81_v2  ;;  %4977 = vmatprep.subr.mxu0 %v76_v1  ;;  %v78_v8 = vld [vmem:[%s6213_s3 + $0x20] sm:$0xff] }
  0x1d   :  { %4988 = vmatprep.subr.mxu1 %v80_v3  ;;  %4978 = vmatpush3.msra.mxu0 %v76_v1 }
  0x1e   :  { %4989 = vmatpush3.msra.mxu1 %v80_v3  ;;  %4979 = vmatprep.subr.mxu0 %v75_v4 }
  0x1f   :  { %v5586_v6 = vld [vmem:[%s6236_s30] sm:$0xff]  ;;  %4990 = vmatprep.subr.mxu1 %v79_v5  ;;  %4980 = vmatpush3.msra.mxu0 %v75_v4  ;;  %v5599_v9 = vld [vmem:[%s6236_s30 + $0x8] sm:$0xff] }
  0x20   :  { %4983 = vmatprep.mubr.msk.f32.mxu0 %vm90_vm0, %v5586_v6 }
  0x21   :  { %29 = vsyncpa [#allocation5], 0  ;;  %4981 = vmatprep.subr.mxu0 %v74_v7  ;;  %4991 = vmatpush3.msra.mxu1 %v79_v5  ;;  %v84_v11 = vld [vmem:[%s6213_s3 + $0x50] sm:$0xff]  ;;  %v89_v12 = vld [vmem:[%s6213_s3 + $0x78] sm:$0xff]  ;;  %v5459_v18 = vmov 0.0   ;;  %vm5460_vm1 = vmmov 0   ;;  %v68_v31 = vlaneseq }
  0x22   :  { %4982 = vmatpush3.msra.mxu0 %v74_v7  ;;  %4992 = vmatprep.subr.mxu1 %v78_v8  ;;  %v83_v13 = vld [vmem:[%s6213_s3 + $0x48] sm:$0xff]  ;;  %v88_v14 = vld [vmem:[%s6213_s3 + $0x70] sm:$0xff]  ;;  %v82_v15 = vld [vmem:[%s6213_s3 + $0x40] sm:$0xff]  ;;  %vm404_vm2 = vcmask 64512   ;;  %v5462_v34 = vmov -1000000.0  }
  0x23   :  { %4984 = vmatmul.mubr.msk.f32.vlgmr.msra.gmra.mxu0 %vm90_vm0, %v5599_v9  ;;  %4997 = vmatprep.subr.mxu0 %v85_v10  ;;  %v87_v16 = vld [vmem:[%s6213_s3 + $0x68] sm:$0xff]  ;;  %v86_v17 = vld [vmem:[%s6213_s3 + $0x60] sm:$0xff]  ;;  %s5461_s3 = smov 120   ;;  %v69_v32 = vshrl.u32 %v68_v31, 7  ;;  %v5677_v33 = vand.u32 127, %v68_v31  ;;  %s5463_s2 = smov 112  }
  0x24   :  { %4993 = vmatpush3.msra.mxu1 %v78_v8  ;;  %4994 = vmatprep.mubr.msk.f32.mxu1 %vm90_vm0, %v5586_v6  ;;  %s6237_s28 = sld [smem:[#allocation10_spill]]  ;;  %vm4552_vm6 = vcmask 523264   ;;  %s5464_s23 = smov [#allocation4]  }
  0x25   :  { %4998 = vmatpush3.msra.mxu0 %v85_v10  ;;  %4995 = vmatmul.mubr.msk.f32.vlgmr.msra.gmra.mxu1 %vm90_vm0, %v5599_v9  ;;  %vm72_vm3 = vcmp.le.s32.totalorder %v5677_v33, %v69_v32  ;;  %s4768_s27 = sld [smem:[#allocation3 + $0x1]]  ;;  %s4687_s24 = sshll.u32 %s5464_s23, 4  ;;  %s4688_s24 = int_to_ptr.vmem [resolvable:$true] %s4687_s24 }
  0x26   :  { %4999 = vmatprep.subr.mxu0 %v84_v11  ;;  %5008 = vmatprep.subr.mxu1 %v89_v12  ;;  %v5681_v35 = vsel %vm72_vm3, 0.0, %v5462_v34  ;;  %s5434_s12 = scalar_lea.vmem %s4688_s24, 256  ;;  %p5439_p6 = scmp.lt.s32.totalorder %s4688_s24, %s4688_s24 }
  0x27   :  { %5000 = vmatpush3.msra.mxu0 %v84_v11  ;;  %5009 = vmatpush3.msra.mxu1 %v89_v12  ;;  %p5435_p5 = scmp.ne.s32.totalorder %s4688_s24, %s5434_s12  ;;  %p5440_p7 = scmp.lt.s32.totalorder %s5434_s12, %s5434_s12 }
  0x28   :  { %5001 = vmatprep.subr.mxu0 %v83_v13  ;;  %5010 = vmatprep.subr.mxu1 %v88_v14 }
  0x29   :  { %5002 = vmatpush3.msra.mxu0 %v83_v13  ;;  %5011 = vmatpush3.msra.mxu1 %v88_v14  ;;  %p5441_p8 = por %p5440_p7, %p5439_p6 }
  0x2a   :  { %5003 = vmatprep.subr.mxu0 %v82_v15  ;;  %5012 = vmatprep.subr.mxu1 %v87_v16 }
  0x2b   :  { %5004 = vmatpush3.msra.mxu0 %v82_v15  ;;  %5005 = vmatprep.mubr.msk.f32.mxu0 %vm90_vm0, %v5586_v6  ;;  %p5442_p9 = pnand %p5441_p8, %p5435_p5 }
  0x2c   :  { %5013 = vmatpush3.msra.mxu1 %v87_v16  ;;  %5006 = vmatmul.mubr.msk.f32.vlgmr.msra.gmra.mxu0 %vm90_vm0, %v5599_v9 }
  0x2d   :  { %5014 = vmatprep.subr.mxu1 %v86_v17  ;;  %5016 = vmatprep.mubr.msk.f32.mxu1 %vm90_vm0, %v5586_v6 }
  0x2e   :  { %5015 = vmatpush3.msra.mxu1 %v86_v17  ;;  %5019 = vmatprep.subr.mxu0 %v5459_v18 }
  0x2f   :  { %5017 = vmatmul.mubr.msk.f32.vlgmr.msra.gmra.mxu1 %vm90_vm0, %v5599_v9  ;;  %5034 = vmatprep.subr.mxu1 %v5459_v18 }
  0x30   :  { %5021 = vmatprep.mubr.msk.f32.mxu0 %vm5460_vm1, %v5459_v18  ;;  %5036 = vmatprep.mubr.msk.f32.mxu1 %vm5460_vm1, %v5459_v18 }
  0xe3   :  { %v5645_v19 = vpop.f32.mrf.mxu0 }
  0xe5   :  { %v163_v20 = vpop.f32.mrf.mxu0  ;;  %v5647_v21 = vpop.f32.mrf.mxu1 }
  0xe6   :  { %402 = vrot.lane.b32.xlu0 %v163_v20, %s5461_s3 }
  0xe7   :  { %v238_v22 = vpop.f32.mrf.mxu1 }
  0xea   :  { %480 = vrot.lane.b32.xlu0 %v238_v22, %s5461_s3 }
  0xec   :  { %v5651_v23 = vpop.f32.mrf.mxu0 }
  0xee   :  { %v313_v24 = vpop.f32.mrf.mxu0 }
  0xef   :  { %v5653_v25 = vpop.f32.mrf.mxu1  ;;  %557 = vrot.lane.b32.xlu1 %v313_v24, %s5461_s3 }
  0xf1   :  { %v388_v26 = vpop.f32.mrf.mxu1 }
  0xf3   :  { %634 = vrot.lane.b32.xlu1 %v388_v26, %s5461_s3 }
 0x158   :  { %v403_v27 = vpop.permute.xlu0 %402 }
 0x159   :  { %5020 = vmatpush3.xpose.msk.msra.mxu0 %vm404_vm2, %v403_v27 }
 0x15a   :  { %5024 = vmatprep.subr.mxu0 %v5459_v18 }
 0x15c   :  { %5022 = vmatmul.mubr.msk.f32.vlgmr.msra.gmra.mxu0 %vm404_vm2, %v163_v20  ;;  %v481_v28 = vpop.permute.xlu0 %480 }
 0x15d   :  { %5025 = vmatpush3.xpose.msk.msra.mxu0 %vm404_vm2, %v481_v28  ;;  %5026 = vmatprep.mubr.msk.f32.mxu0 %vm5460_vm1, %v5459_v18 }
 0x15e   :  { %5029 = vmatprep.subr.mxu0 %v5459_v18 }
 0x160   :  { %5027 = vmatmul.mubr.msk.f32.vlgmr.msra.gmra.mxu0 %vm404_vm2, %v238_v22 }
 0x161   :  { %v558_v29 = vpop.permute.xlu1 %557  ;;  %5031 = vmatprep.mubr.msk.f32.mxu0 %vm5460_vm1, %v5459_v18 }
 0x162   :  { %5030 = vmatpush3.xpose.msk.msra.mxu0 %vm404_vm2, %v558_v29 }
 0x163   :  { %5039 = vmatprep.subr.mxu0 %v5459_v18 }
 0x165   :  { %5032 = vmatmul.mubr.msk.f32.vlgmr.msra.gmra.mxu0 %vm404_vm2, %v313_v24  ;;  %v635_v30 = vpop.permute.xlu1 %634 }
 0x166   :  { %5035 = vmatpush3.xpose.msk.msra.mxu1 %vm404_vm2, %v635_v30  ;;  %5041 = vmatprep.mubr.msk.f32.mxu0 %vm5460_vm1, %v5459_v18 }
 0x167   :  { %5044 = vmatprep.subr.mxu1 %v5459_v18 }
 0x169   :  { %5037 = vmatmul.mubr.msk.f32.vlgmr.msra.gmra.mxu1 %vm404_vm2, %v388_v26 }
 0x16a   :  { %5046 = vmatprep.mubr.msk.f32.mxu1 %vm5460_vm1, %v5459_v18 }
 0x21c   :  { %v475_v36 = vpop.f32.mrf.mxu0 }
 0x21d   :  { %v476_v37 = vadd.f32 %v475_v36, %v5681_v35 }
 0x21e   :  { %v5023_v38 = vpop.f32.mrf.mxu0 }
 0x21f   :  { %v710_v39 = vsel %vm404_vm2, %v476_v37, -inf }
 0x220   :  { %711 = vmax.xlane.f32.xlu0 %v710_v39  ;;  %v552_v40 = vpop.f32.mrf.mxu0 }
 0x221   :  { %v553_v41 = vadd.f32 %v552_v40, %v5681_v35 }
 0x222   :  { %v5028_v42 = vpop.f32.mrf.mxu0 }
 0x223   :  { %v713_v43 = vsel %vm404_vm2, %v553_v41, -inf }
 0x224   :  { %714 = vmax.xlane.f32.xlu1 %v713_v43 }
 0x225   :  { %v629_v44 = vpop.f32.mrf.mxu0 }
 0x226   :  { %v630_v45 = vadd.f32 %v629_v44, %v5681_v35 }
 0x227   :  { %v5033_v46 = vpop.f32.mrf.mxu0 }
 0x228   :  { %v716_v47 = vsel %vm404_vm2, %v630_v45, -inf }
 0x229   :  { %v706_v48 = vpop.f32.mrf.mxu1  ;;  %717 = vmax.xlane.f32.xlu0 %v716_v47 }
 0x22a   :  { %v707_v49 = vadd.f32 %v706_v48, %v5681_v35 }
 0x22b   :  { %v5038_v50 = vpop.f32.mrf.mxu1 }
 0x22c   :  { %v719_v51 = vsel %vm404_vm2, %v707_v49, -inf }
 0x22d   :  { %720 = vmax.xlane.f32.xlu0 %v719_v51 }
 0x235   :  { %754 = vrot.lane.b32.xlu1 %v163_v20, %s5463_s2 }
 0x239   :  { %906 = vrot.lane.b32.xlu1 %v313_v24, %s5463_s2 }
 0x23d   :  { %982 = vrot.lane.b32.xlu1 %v388_v26, %s5463_s2 }
 0x241   :  { %1136 = vrot.lane.b32.xlu1 %v5647_v21, %s5461_s3 }
 0x243   :  { %830 = vrot.lane.b32.xlu0 %v238_v22, %s5463_s2 }
 0x247   :  { %1059 = vrot.lane.b32.xlu0 %v5645_v19, %s5461_s3 }
 0x2a9   :  { %v712_v52 = vpop.xlane.xlu0 %711 }
 0x2aa   :  { %v722_v53 = vsub.f32 %v476_v37, %v712_v52 }
 0x2ac   :  { %v726_v54 = vmul.f32 1.442695, %v722_v53 }
 0x2ad   :  { %v715_v55 = vpop.xlane.xlu1 %714 }
 0x2ae   :  { %5346 = vpow2.f32 %v726_v54  ;;  %v723_v56 = vsub.f32 %v553_v41, %v715_v55 }
 0x2b0   :  { %v728_v57 = vmul.f32 1.442695, %v723_v56 }
 0x2b1   :  { %v755_v58 = vpop.permute.xlu1 %754 }
 0x2b2   :  { %5348 = vpow2.f32 %v728_v57  ;;  %v718_v59 = vpop.xlane.xlu0 %717  ;;  %5040 = vmatpush3.msra.mxu0 %v755_v58 }
 0x2b3   :  { %v724_v60 = vsub.f32 %v630_v45, %v718_v59  ;;  %5049 = vmatprep.subr.mxu0 %v5459_v18 }
 0x2b5   :  { %v730_v61 = vmul.f32 1.442695, %v724_v60  ;;  %v907_v12 = vpop.permute.xlu1 %906 }
 0x2b6   :  { %v721_v62 = vpop.xlane.xlu0 %720 }
 0x2b7   :  { %5350 = vpow2.f32 %v730_v61  ;;  %v725_v63 = vsub.f32 %v707_v49, %v721_v62 }
 0x2b9   :  { %v732_v0 = vmul.f32 1.442695, %v725_v63  ;;  %v983_v13 = vpop.permute.xlu1 %982 }
 0x2ba   :  { %v831_v1 = vpop.permute.xlu0 %830 }
 0x2bb   :  { %v5347_v2 = vpop.eup %5346  ;;  %5352 = vpow2.f32 %v732_v0  ;;  %5045 = vmatpush3.msra.mxu1 %v831_v1 }
 0x2bc   :  { %v734_v3 = vsel %vm404_vm2, %v5347_v2, 0.0  ;;  %5054 = vmatprep.subr.mxu1 %v5459_v18 }
 0x2bd   :  { %735 = vadd.xlane.f32.xlu1 %v734_v3  ;;  %v1137_v14 = vpop.permute.xlu1 %1136 }
 0x2be   :  { %v1060_v15 = vpop.permute.xlu0 %1059 }
 0x2bf   :  { %v5349_v4 = vpop.eup %5348 }
 0x2c0   :  { %v737_v5 = vsel %vm404_vm2, %v5349_v4, 0.0 }
 0x2c1   :  { %738 = vadd.xlane.f32.xlu0 %v737_v5 }
 0x2c4   :  { %v5351_v7 = vpop.eup %5350 }
 0x2c5   :  { %v740_v8 = vsel %vm404_vm2, %v5351_v7, 0.0 }
 0x2c6   :  { %741 = vadd.xlane.f32.xlu1 %v740_v8 }
 0x2c8   :  { %v5353_v10 = vpop.eup %5352 }
 0x2c9   :  { %v743_v11 = vsel %vm404_vm2, %v5353_v10, 0.0 }
 0x2ca   :  { %744 = vadd.xlane.f32.xlu0 %v743_v11 }
 0x2d7   :  { %1290 = vrot.lane.b32.xlu1 %v5653_v25, %s5461_s3 }
 0x2e0   :  { %1213 = vrot.lane.b32.xlu0 %v5651_v23, %s5461_s3 }
 0x346   :  { %v736_v16 = vpop.xlane.xlu1 %735 }
 0x347   :  { %5354 = vrcp.f32 %v736_v16 }
 0x34a   :  { %v739_v17 = vpop.xlane.xlu0 %738 }
 0x34b   :  { %5356 = vrcp.f32 %v739_v17 }
 0x34f   :  { %v742_v20 = vpop.xlane.xlu1 %741 }
 0x350   :  { %5358 = vrcp.f32 %v742_v20 }
 0x353   :  { %v745_v22 = vpop.xlane.xlu0 %744  ;;  %v1291_v37 = vpop.permute.xlu1 %1290 }
 0x354   :  { %v5355_v24 = vpop.eup %5354  ;;  %5360 = vrcp.f32 %v745_v22 }
 0x355   :  { %v750_v26 = vmul.f32 %v5355_v24, %v5347_v2 }
 0x357   :  { %5042 = vmatmul.mubr.msk.f32.vlgmr.msra.gmra.mxu0 %vm404_vm2, %v750_v26  ;;  %v1214_v36 = vpop.permute.xlu0 %1213 }
 0x358   :  { %v5357_v27 = vpop.eup %5356  ;;  %5050 = vmatpush3.msra.mxu0 %v907_v12  ;;  %5051 = vmatprep.mubr.msk.f32.mxu0 %vm5460_vm1, %v5459_v18 }
 0x359   :  { %v751_v28 = vmul.f32 %v5357_v27, %v5349_v4  ;;  %5059 = vmatprep.subr.mxu0 %v5459_v18 }
 0x35b   :  { %5047 = vmatmul.mubr.msk.f32.vlgmr.msra.gmra.mxu1 %vm404_vm2, %v751_v28 }
 0x35c   :  { %5055 = vmatpush3.msra.mxu1 %v983_v13  ;;  %5056 = vmatprep.mubr.msk.f32.mxu1 %vm5460_vm1, %v5459_v18 }
 0x35d   :  { %v5359_v29 = vpop.eup %5358  ;;  %5064 = vmatprep.subr.mxu1 %v5459_v18 }
 0x35e   :  { %v752_v30 = vmul.f32 %v5359_v29, %v5351_v7 }
 0x360   :  { %5052 = vmatmul.mubr.msk.f32.vlgmr.msra.gmra.mxu0 %vm404_vm2, %v752_v30 }
 0x361   :  { %v5361_v31 = vpop.eup %5360  ;;  %5060 = vmatpush3.xpose.msk.msra.mxu0 %vm404_vm2, %v1060_v15  ;;  %5061 = vmatprep.mubr.msk.f32.mxu0 %vm5460_vm1, %v5459_v18 }
 0x362   :  { %5069 = vmatprep.subr.mxu0 %v5459_v18  ;;  %v753_v32 = vmul.f32 %v5361_v31, %v5353_v10 }
 0x364   :  { %5057 = vmatmul.mubr.msk.f32.vlgmr.msra.gmra.mxu1 %vm404_vm2, %v753_v32  ;;  %5062 = vmatmul.mubr.msk.f32.vlgmr.msra.gmra.mxu0 %vm404_vm2, %v5645_v19 }
 0x365   :  { %5065 = vmatpush3.xpose.msk.msra.mxu1 %vm404_vm2, %v1137_v14  ;;  %5070 = vmatpush3.xpose.msk.msra.mxu0 %vm404_vm2, %v1214_v36 }
 0x366   :  { %5066 = vmatprep.mubr.msk.f32.mxu1 %vm5460_vm1, %v5459_v18  ;;  %5071 = vmatprep.mubr.msk.f32.mxu0 %vm5460_vm1, %v5459_v18 }
 0x367   :  { %5074 = vmatprep.subr.mxu1 %v5459_v18  ;;  %5079 = vmatprep.subr.mxu0 %v5459_v18 }
 0x368   :  { %5067 = vmatmul.mubr.msk.f32.vlgmr.msra.gmra.mxu1 %vm404_vm2, %v5647_v21  ;;  %5072 = vmatmul.mubr.msk.f32.vlgmr.msra.gmra.mxu0 %vm404_vm2, %v5651_v23 }
 0x369   :  { %5075 = vmatpush3.xpose.msk.msra.mxu1 %vm404_vm2, %v1291_v37  ;;  %5076 = vmatprep.mubr.msk.f32.mxu1 %vm5460_vm1, %v5459_v18 }
 0x36a   :  { %5084 = vmatprep.subr.mxu1 %v5459_v18  ;;  %5081 = vmatprep.mubr.msk.f32.mxu0 %vm5460_vm1, %v5459_v18 }
 0x36c   :  { %5077 = vmatmul.mubr.msk.f32.vlgmr.msra.gmra.mxu1 %vm404_vm2, %v5653_v25 }
 0x36d   :  { %5086 = vmatprep.mubr.msk.f32.mxu1 %vm5460_vm1, %v5459_v18 }
 0x417   :  { %v5747_v38 = vpop.f32.mrf.mxu0 }
 0x419   :  { %v5043_v39 = vpop.f32.mrf.mxu0 }
 0x41b   :  { %v5749_v40 = vpop.f32.mrf.mxu1 }
 0x41d   :  { %v5048_v41 = vpop.f32.mrf.mxu1 }
 0x420   :  { %v5751_v42 = vpop.f32.mrf.mxu0 }
 0x422   :  { %v5053_v43 = vpop.f32.mrf.mxu0 }
 0x423   :  { %v398_v43 = vld [vmem:[%s6214_s4 + $0x8] sm:$0xff] }
 0x424   :  { %v5753_v44 = vpop.f32.mrf.mxu1  ;;  %v1131_v45 = vpop.f32.mrf.mxu0 }
 0x425   :  { %v1132_v46 = vadd.f32 %v1131_v45, %v5681_v35  ;;  %v399_v45 = vld [vmem:[%s6214_s4 + $0x10] sm:$0xff] }
 0x426   :  { %v5058_v47 = vpop.f32.mrf.mxu1  ;;  %v5063_v48 = vpop.f32.mrf.mxu0 }
 0x427   :  { %v1366_v49 = vsel %vm404_vm2, %v1132_v46, -inf }
 0x428   :  { %v1208_v50 = vpop.f32.mrf.mxu1  ;;  %1367 = vmax.xlane.f32.xlu0 %v1366_v49  ;;  %v1285_v51 = vpop.f32.mrf.mxu0 }
 0x429   :  { %v1209_v52 = vadd.f32 %v1208_v50, %v5681_v35  ;;  %v1286_v53 = vadd.f32 %v1285_v51, %v5681_v35 }
 0x42a   :  { %v5068_v54 = vpop.f32.mrf.mxu1  ;;  %v5073_v55 = vpop.f32.mrf.mxu0 }
 0x42b   :  { %v1369_v56 = vsel %vm404_vm2, %v1209_v52, -inf  ;;  %v1372_v57 = vsel %vm404_vm2, %v1286_v53, -inf }
 0x42c   :  { %1370 = vmax.xlane.f32.xlu1 %v1369_v56  ;;  %v1362_v58 = vpop.f32.mrf.mxu1  ;;  %1373 = vmax.xlane.f32.xlu0 %v1372_v57 }
 0x42d   :  { %v1363_v59 = vadd.f32 %v1362_v58, %v5681_v35 }
 0x42e   :  { %v5078_v60 = vpop.f32.mrf.mxu1 }
 0x42f   :  { %v1375_v61 = vsel %vm404_vm2, %v1363_v59, -inf }
 0x430   :  { %1376 = vmax.xlane.f32.xlu0 %v1375_v61 }
 0x43d   :  { %1410 = vrot.lane.b32.xlu1 %v5645_v19, %s5463_s2 }
 0x4b1   :  { %v1368_v62 = vpop.xlane.xlu0 %1367 }
 0x4b2   :  { %v1378_v63 = vsub.f32 %v1132_v46, %v1368_v62 }
 0x4b4   :  { %v1382_v0 = vmul.f32 1.442695, %v1378_v63 }
 0x4b5   :  { %v1371_v1 = vpop.xlane.xlu1 %1370  ;;  %v1374_v2 = vpop.xlane.xlu0 %1373 }
 0x4b6   :  { %5362 = vpow2.f32 %v1382_v0  ;;  %v1379_v3 = vsub.f32 %v1209_v52, %v1371_v1  ;;  %v1380_v4 = vsub.f32 %v1286_v53, %v1374_v2 }
 0x4b8   :  { %v1384_v5 = vmul.f32 1.442695, %v1379_v3  ;;  %v1386_v7 = vmul.f32 1.442695, %v1380_v4 }
 0x4b9   :  { %v1411_v8 = vpop.permute.xlu1 %1410  ;;  %v1377_v10 = vpop.xlane.xlu0 %1376 }
 0x4ba   :  { %5364 = vpow2.f32 %v1384_v5  ;;  %v1381_v35 = vsub.f32 %v1363_v59, %v1377_v10  ;;  %5080 = vmatpush3.msra.mxu0 %v1411_v8 }
 0x4bb   :  { %5366 = vpow2.f32 %v1386_v7  ;;  %5089 = vmatprep.subr.mxu0 %v5459_v18 }
 0x4bc   :  { %v1388_v11 = vmul.f32 1.442695, %v1381_v35 }
 0x4be   :  { %5368 = vpow2.f32 %v1388_v11 }
 0x4c3   :  { %v5363_v19 = vpop.eup %5362 }
 0x4c4   :  { %v1390_v12 = vsel %vm404_vm2, %v5363_v19, 0.0 }
 0x4c5   :  { %1391 = vadd.xlane.f32.xlu1 %v1390_v12 }
 0x4c7   :  { %v5365_v13 = vpop.eup %5364 }
 0x4c8   :  { %v5367_v14 = vpop.eup %5366  ;;  %v1393_v15 = vsel %vm404_vm2, %v5365_v13, 0.0 }
 0x4c9   :  { %1394 = vadd.xlane.f32.xlu0 %v1393_v15  ;;  %v1396_v16 = vsel %vm404_vm2, %v5367_v14, 0.0 }
 0x4ca   :  { %1397 = vadd.xlane.f32.xlu1 %v1396_v16 }
 0x4cb   :  { %v5369_v17 = vpop.eup %5368 }
 0x4cc   :  { %v1399_v20 = vsel %vm404_vm2, %v5369_v17, 0.0 }
 0x4cd   :  { %1400 = vadd.xlane.f32.xlu0 %v1399_v20 }
 0x4db   :  { %1562 = vrot.lane.b32.xlu1 %v5651_v23, %s5463_s2 }
 0x4df   :  { %1638 = vrot.lane.b32.xlu1 %v5653_v25, %s5463_s2  ;;  %v397_v25 = vld [vmem:[%s6214_s4] sm:$0xff] }
 0x4e3   :  { %1486 = vrot.lane.b32.xlu0 %v5647_v21, %s5463_s2 }
 0x54e   :  { %v1392_v22 = vpop.xlane.xlu1 %1391 }
 0x54f   :  { %5370 = vrcp.f32 %v1392_v22 }
 0x552   :  { %v1395_v24 = vpop.xlane.xlu0 %1394 }
 0x553   :  { %v1398_v26 = vpop.xlane.xlu1 %1397  ;;  %5372 = vrcp.f32 %v1395_v24 }
 0x554   :  { %5374 = vrcp.f32 %v1398_v26 }
 0x556   :  { %v1401_v27 = vpop.xlane.xlu0 %1400 }
 0x557   :  { %5376 = vrcp.f32 %v1401_v27  ;;  %v1563_v23 = vpop.permute.xlu1 %1562  ;;  %v2106_v27 = vld [vmem:[%s6215_s5 + $0x38] sm:$0xff] }
 0x55a   :  { %v1487_v28 = vpop.permute.xlu0 %1486 }
 0x55b   :  { %5085 = vmatpush3.msra.mxu1 %v1487_v28  ;;  %v1639_v37 = vpop.permute.xlu1 %1638  ;;  %v2101_v28 = vld [vmem:[%s6215_s5 + $0x10] sm:$0xff] }
 0x55c   :  { %v5371_v29 = vpop.eup %5370  ;;  %5094 = vmatprep.subr.mxu1 %v5459_v18 }
 0x55d   :  { %v1406_v30 = vmul.f32 %v5371_v29, %v5363_v19  ;;  %v2105_v29 = vld [vmem:[%s6215_s5 + $0x30] sm:$0xff] }
 0x55f   :  { %5082 = vmatmul.mubr.msk.f32.vlgmr.msra.gmra.mxu0 %vm404_vm2, %v1406_v30  ;;  %v2104_v30 = vld [vmem:[%s6215_s5 + $0x28] sm:$0xff] }
 0x560   :  { %v5373_v21 = vpop.eup %5372  ;;  %5090 = vmatpush3.msra.mxu0 %v1563_v23  ;;  %5091 = vmatprep.mubr.msk.f32.mxu0 %vm5460_vm1, %v5459_v18  ;;  %v2100_v23 = vld [vmem:[%s6215_s5 + $0x8] sm:$0xff] }
 0x561   :  { %v5375_v31 = vpop.eup %5374  ;;  %v1407_v32 = vmul.f32 %v5373_v21, %v5365_v13  ;;  %5099 = vmatprep.subr.mxu0 %v397_v25  ;;  %v2103_v21 = vld [vmem:[%s6215_s5 + $0x20] sm:$0xff] }
 0x562   :  { %v1408_v36 = vmul.f32 %v5375_v31, %v5367_v14  ;;  %v2110_v31 = vld [vmem:[%s6215_s5 + $0x58] sm:$0xff] }
 0x563   :  { %5087 = vmatmul.mubr.msk.f32.vlgmr.msra.gmra.mxu1 %vm404_vm2, %v1407_v32  ;;  %v2114_v32 = vld [vmem:[%s6215_s5 + $0x78] sm:$0xff] }
 0x564   :  { %v5377_v39 = vpop.eup %5376  ;;  %5092 = vmatmul.mubr.msk.f32.vlgmr.msra.gmra.mxu0 %vm404_vm2, %v1408_v36  ;;  %5095 = vmatpush3.msra.mxu1 %v1639_v37 }
 0x565   :  { %5101 = vmatprep.mubr.msk.f32.mxu0 %vm404_vm2, %v5747_v38  ;;  %5096 = vmatprep.mubr.msk.f32.mxu1 %vm5460_vm1, %v5459_v18  ;;  %v1409_v41 = vmul.f32 %v5377_v39, %v5369_v17  ;;  %v400_v38 = vld [vmem:[%s6214_s4 + $0x18] sm:$0xff] }
 0x566   :  { %5100 = vmatpush3.msra.mxu0 %v397_v25  ;;  %5104 = vmatprep.subr.mxu1 %v398_v43  ;;  %v2099_v25 = vld [vmem:[%s6215_s5] sm:$0xff] }
 0x567   :  { %5097 = vmatmul.mubr.msk.f32.vlgmr.msra.gmra.mxu1 %vm404_vm2, %v1409_v41  ;;  %5109 = vmatprep.subr.mxu0 %v399_v45 }
 0x568   :  { %5106 = vmatprep.mubr.msk.f32.mxu1 %vm404_vm2, %v5749_v40  ;;  %5105 = vmatpush3.msra.mxu1 %v398_v43 }
 0x569   :  { %5114 = vmatprep.subr.mxu1 %v400_v38 }
 0x61f   :  { %v1482_v46 = vpop.f32.mrf.mxu0 }
 0x620   :  { %5102 = vmatmul.mubr.msk.f32.vlgmr.msra.gmra.mxu0 %vm404_vm2, %v1482_v46  ;;  %v4738_v46 = vld [vmem:[%s6218_s8] ss:$0 sm:$0xff] }
 0x621   :  { %v5083_v40 = vpop.f32.mrf.mxu0  ;;  %5111 = vmatprep.mubr.msk.f32.mxu0 %vm404_vm2, %v5751_v42  ;;  %5110 = vmatpush3.msra.mxu0 %v399_v45 }
 0x623   :  { %v1558_v47 = vpop.f32.mrf.mxu1 }
 0x624   :  { %v1634_v48 = vpop.f32.mrf.mxu0  ;;  %5107 = vmatmul.mubr.msk.f32.vlgmr.msra.gmra.mxu1 %vm404_vm2, %v1558_v47  ;;  %v4739_v47 = vld [vmem:[%s6219_s9] ss:$0 sm:$0xff] }
 0x625   :  { %5112 = vmatmul.mubr.msk.f32.vlgmr.msra.gmra.mxu0 %vm404_vm2, %v1634_v48  ;;  %v5088_v49 = vpop.f32.mrf.mxu1  ;;  %5115 = vmatpush3.msra.mxu1 %v400_v38 }
 0x626   :  { %v5093_v50 = vpop.f32.mrf.mxu0  ;;  %5116 = vmatprep.mubr.msk.f32.mxu1 %vm404_vm2, %v5753_v44  ;;  %5130 = vmatprep.subr.mxu1 %v2106_v27 }
 0x627   :  { %v1710_v51 = vpop.f32.mrf.mxu1 }
 0x628   :  { %5117 = vmatmul.mubr.msk.f32.vlgmr.msra.gmra.mxu1 %vm404_vm2, %v1710_v51 }
 0x629   :  { %v5098_v52 = vpop.f32.mrf.mxu1  ;;  %5131 = vmatpush3.msra.mxu1 %v2106_v27 }
 0x62a   :  { %5132 = vmatprep.subr.mxu1 %v2105_v29 }
 0x62b   :  { %5133 = vmatpush3.msra.mxu1 %v2105_v29 }
 0x62c   :  { %5134 = vmatprep.subr.mxu1 %v2104_v30 }
 0x62d   :  { %5135 = vmatpush3.msra.mxu1 %v2104_v30 }
 0x62e   :  { %5136 = vmatprep.subr.mxu1 %v2103_v21 }
 0x62f   :  { %5137 = vmatpush3.msra.mxu1 %v2103_v21 }
 0x630   :  { %5152 = vmatprep.subr.mxu1 %v2114_v32 }
 0x6e0   :  { %v5103_v53 = vpop.f32.mrf.mxu0 }
 0x6e1   :  { %v2045_v55 = vsel %vm90_vm0, %v5103_v53, 0.0 }
 0x6e2   :  { %v1786_v54 = vpop.f32.mrf.mxu0 }
 0x6e3   :  { %v2038_v60 = vsel %vm90_vm0, %v1786_v54, 0.0  ;;  %v2109_v54 = vld [vmem:[%s6215_s5 + $0x50] sm:$0xff] }
 0x6e4   :  { %v5108_v42 = vpop.f32.mrf.mxu1 }
 0x6e5   :  { %v2046_v56 = vsel %vm90_vm0, %v5108_v42, 0.0  ;;  %v5113_v57 = vpop.f32.mrf.mxu0  ;;  %v2113_v42 = vld [vmem:[%s6215_s5 + $0x70] sm:$0xff] }
 0x6e6   :  { %v2047_v58 = vadd.f32 %v2046_v56, %v2045_v55  ;;  %v1867_v59 = vpop.f32.mrf.mxu1  ;;  %v2048_v61 = vsel %vm90_vm0, %v5113_v57, 0.0  ;;  %v2108_v55 = vld [vmem:[%s6215_s5 + $0x48] sm:$0xff]  ;;  %v2107_v57 = vld [vmem:[%s6215_s5 + $0x40] sm:$0xff] }
 0x6e7   :  { %v2039_v44 = vsel %vm90_vm0, %v1867_v59, 0.0  ;;  %v1948_v62 = vpop.f32.mrf.mxu0  ;;  %v2112_v56 = vld [vmem:[%s6215_s5 + $0x68] sm:$0xff]  ;;  %v2424_v59 = vld [vmem:[%s6216_s6 + $0x18] sm:$0xff] }
 0x6e8   :  { %v2049_v63 = vadd.f32 %v2048_v61, %v2047_v58  ;;  %v2040_v0 = vadd.f32 %v2039_v44, %v2038_v60  ;;  %v5118_v1 = vpop.f32.mrf.mxu1  ;;  %v2041_v2 = vsel %vm90_vm0, %v1948_v62, 0.0  ;;  %v2111_v58 = vld [vmem:[%s6215_s5 + $0x60] sm:$0xff]  ;;  %v2428_v60 = vld [vmem:[%s6216_s6 + $0x38] sm:$0xff]  ;;  %v2423_v61 = vld [vmem:[%s6216_s6 + $0x10] sm:$0xff] }
 0x6e9   :  { %v2050_v3 = vsel %vm90_vm0, %v5118_v1, 0.0  ;;  %v2427_v44 = vld [vmem:[%s6216_s6 + $0x30] sm:$0xff]  ;;  %v2422_v62 = vld [vmem:[%s6216_s6 + $0x8] sm:$0xff]  ;;  %v2425_v1 = vld [vmem:[%s6216_s6 + $0x20] sm:$0xff] }
 0x6ea   :  { %v2042_v4 = vadd.f32 %v2041_v2, %v2040_v0  ;;  %v2051_v5 = vadd.f32 %v2050_v3, %v2049_v63  ;;  %v2029_v7 = vpop.f32.mrf.mxu1  ;;  %v2426_v63 = vld [vmem:[%s6216_s6 + $0x28] sm:$0xff]  ;;  %v2421_v0 = vld [vmem:[%s6216_s6] sm:$0xff] }
 0x6eb   :  { %v2043_v8 = vsel %vm90_vm0, %v2029_v7, 0.0  ;;  %v66_v2 = vld [vmem:[%s6237_s28] sm:$0xff]  ;;  %v67_v3 = vld [vmem:[%s6237_s28 + $0x8] sm:$0xff]  ;;  %v2431_v7 = vld [vmem:[%s6216_s6 + $0x50] sm:$0xff] }
 0x6ec   :  { %v2044_v10 = vadd.f32 %v2043_v8, %v2042_v4  ;;  %v2053_v35 = vadd.f32 %v2051_v5, %v5599_v9  ;;  %v2432_v4 = vld [vmem:[%s6216_s6 + $0x58] sm:$0xff]  ;;  %v2435_v8 = vld [vmem:[%s6216_s6 + $0x70] sm:$0xff] }
 0x6ed   :  { %v2436_v5 = vld [vmem:[%s6216_s6 + $0x78] sm:$0xff] }
 0x6ee   :  { %v2059_v11 = vsel %vm90_vm0, %v2053_v35, 0.0  ;;  %v2052_v19 = vadd.f32 %v2044_v10, %v5586_v6  ;;  %v2102_v6 = vld [vmem:[%s6215_s5 + $0x18] sm:$0xff]  ;;  %v2430_v10 = vld [vmem:[%s6216_s6 + $0x48] sm:$0xff] }
 0x6ef   :  { %2060 = vadd.xlane.f32.xlu1 %v2059_v11  ;;  %5119 = vmatprep.subr.mxu0 %v2102_v6  ;;  %v2429_v11 = vld [vmem:[%s6216_s6 + $0x40] sm:$0xff] }
 0x6f0   :  { %v2056_v12 = vsel %vm90_vm0, %v2052_v19, 0.0  ;;  %5120 = vmatpush3.msra.mxu0 %v2102_v6 }
 0x6f1   :  { %2057 = vadd.xlane.f32.xlu0 %v2056_v12  ;;  %5121 = vmatprep.subr.mxu0 %v2101_v28 }
 0x6f2   :  { %5122 = vmatpush3.msra.mxu0 %v2101_v28 }
 0x6f3   :  { %5123 = vmatprep.subr.mxu0 %v2100_v23 }
 0x6f4   :  { %5124 = vmatpush3.msra.mxu0 %v2100_v23 }
 0x6f5   :  { %5125 = vmatprep.subr.mxu0 %v2099_v25 }
 0x6f6   :  { %5126 = vmatpush3.msra.mxu0 %v2099_v25 }
 0x6f7   :  { %5141 = vmatprep.subr.mxu0 %v2110_v31 }
 0x778   :  { %v2061_v13 = vpop.xlane.xlu1 %2060 }
 0x779   :  { %v2064_v14 = vmul.f32 0.03125, %v2061_v13 }
 0x77a   :  { %v2058_v15 = vpop.xlane.xlu0 %2057 }
 0x77b   :  { %v2063_v16 = vmul.f32 0.03125, %v2058_v15  ;;  %v2066_v17 = vsub.f32 %v2053_v35, %v2064_v14  ;;  %v2434_v35 = vld [vmem:[%s6216_s6 + $0x68] sm:$0xff] }
 0x77d   :  { %v2065_v20 = vsub.f32 %v2052_v19, %v2063_v16  ;;  %v2068_v26 = vmul.f32 %v2066_v17, %v2066_v17  ;;  %v2433_v19 = vld [vmem:[%s6216_s6 + $0x60] sm:$0xff]  ;;  %s2747_s6 = sld [smem:[#allocation3]] }
 0x77f   :  { %v2067_v22 = vmul.f32 %v2065_v20, %v2065_v20  ;;  %v2072_v9 = vsel %vm90_vm0, %v2068_v26, 0.0 }
 0x781   :  { %v2069_v24 = vsel %vm90_vm0, %v2067_v22, 0.0 }
 0x782   :  { %2070 = vadd.xlane.f32.xlu0 %v2069_v24 }
 0x783   :  { %v2748_v30 = vstv %s2747_s6 }
 0x784   :  { %vm2749_vm4 = vcmp.lt.s32.totalorder %v5677_v33, %v2748_v30 }
 0x785   :  { %v2750_v25 = vsel %vm2749_vm4, 0.0, %v5462_v34 }
 0x786   :  { %2073 = vadd.xlane.f32.xlu0 %v2072_v9 }
 0x80b   :  { %v2071_v36 = vpop.xlane.xlu0 %2070 }
 0x80c   :  { %v2075_v37 = vmul.f32 0.03125, %v2071_v36 }
 0x80e   :  { %v2077_v39 = vadd.f32 1e-05, %v2075_v37 }
 0x80f   :  { %v2074_v41 = vpop.xlane.xlu0 %2073 }
 0x810   :  { %5378 = vrsqrt.f32 %v2077_v39  ;;  %v2076_v43 = vmul.f32 0.03125, %v2074_v41 }
 0x812   :  { %v2078_v45 = vadd.f32 1e-05, %v2076_v43 }
 0x814   :  { %5380 = vrsqrt.f32 %v2078_v45 }
 0x81d   :  { %v5379_v38 = vpop.eup %5378 }
 0x81e   :  { %v2081_v40 = vmul.f32 %v5379_v38, %v2065_v20 }
 0x820   :  { %v2089_v48 = vmul.f32 %v4738_v46, %v2081_v40 }
 0x821   :  { %v5381_v49 = vpop.eup %5380 }
 0x822   :  { %v2082_v50 = vmul.f32 %v5381_v49, %v2066_v17  ;;  %v5859_v51 = vadd.f32 %v4739_v47, %v2089_v48 }
 0x824   :  { %5127 = vmatprep.mubr.msk.f32.mxu0 %vm90_vm0, %v5859_v51  ;;  %5138 = vmatprep.mubr.msk.f32.mxu1 %vm90_vm0, %v5859_v51  ;;  %v2090_v52 = vmul.f32 %v4738_v46, %v2082_v50 }
 0x826   :  { %v5865_v53 = vadd.f32 %v4739_v47, %v2090_v52 }
 0x828   :  { %5128 = vmatmul.mubr.msk.f32.vlgmr.msra.gmra.mxu0 %vm90_vm0, %v5865_v53  ;;  %5139 = vmatmul.mubr.msk.f32.vlgmr.msra.gmra.mxu1 %vm90_vm0, %v5865_v53 }
 0x829   :  { %5142 = vmatpush3.msra.mxu0 %v2110_v31  ;;  %5153 = vmatpush3.msra.mxu1 %v2114_v32 }
 0x82a   :  { %5143 = vmatprep.subr.mxu0 %v2109_v54  ;;  %5149 = vmatprep.mubr.msk.f32.mxu0 %vm90_vm0, %v5859_v51 }
 0x82b   :  { %5154 = vmatprep.subr.mxu1 %v2113_v42  ;;  %5160 = vmatprep.mubr.msk.f32.mxu1 %vm90_vm0, %v5859_v51 }
 0x82c   :  { %5144 = vmatpush3.msra.mxu0 %v2109_v54  ;;  %5155 = vmatpush3.msra.mxu1 %v2113_v42 }
 0x82d   :  { %5145 = vmatprep.subr.mxu0 %v2108_v55  ;;  %5156 = vmatprep.subr.mxu1 %v2112_v56 }
 0x82e   :  { %5146 = vmatpush3.msra.mxu0 %v2108_v55  ;;  %5157 = vmatpush3.msra.mxu1 %v2112_v56 }
 0x82f   :  { %5147 = vmatprep.subr.mxu0 %v2107_v57  ;;  %5158 = vmatprep.subr.mxu1 %v2111_v58 }
 0x830   :  { %5148 = vmatpush3.msra.mxu0 %v2107_v57  ;;  %5159 = vmatpush3.msra.mxu1 %v2111_v58 }
 0x831   :  { %5150 = vmatmul.mubr.msk.f32.vlgmr.msra.gmra.mxu0 %vm90_vm0, %v5865_v53  ;;  %5161 = vmatmul.mubr.msk.f32.vlgmr.msra.gmra.mxu1 %vm90_vm0, %v5865_v53 }
 0x832   :  { %5163 = vmatprep.subr.mxu0 %v2424_v59  ;;  %5174 = vmatprep.subr.mxu1 %v2428_v60 }
 0x833   :  { %5164 = vmatpush3.msra.mxu0 %v2424_v59  ;;  %5175 = vmatpush3.msra.mxu1 %v2428_v60 }
 0x834   :  { %5165 = vmatprep.subr.mxu0 %v2423_v61  ;;  %5176 = vmatprep.subr.mxu1 %v2427_v44 }
 0x835   :  { %5166 = vmatpush3.msra.mxu0 %v2423_v61  ;;  %5177 = vmatpush3.msra.mxu1 %v2427_v44 }
 0x836   :  { %5167 = vmatprep.subr.mxu0 %v2422_v62  ;;  %5178 = vmatprep.subr.mxu1 %v2426_v63 }
 0x837   :  { %5168 = vmatpush3.msra.mxu0 %v2422_v62  ;;  %5179 = vmatpush3.msra.mxu1 %v2426_v63 }
 0x838   :  { %5169 = vmatprep.subr.mxu0 %v2421_v0  ;;  %5180 = vmatprep.subr.mxu1 %v2425_v1 }
 0x839   :  { %5170 = vmatpush3.msra.mxu0 %v2421_v0  ;;  %5171 = vmatprep.mubr.msk.f32.mxu0 %vm90_vm0, %v66_v2 }
 0x83a   :  { %5181 = vmatpush3.msra.mxu1 %v2425_v1  ;;  %5182 = vmatprep.mubr.msk.f32.mxu1 %vm90_vm0, %v66_v2 }
 0x83b   :  { %5172 = vmatmul.mubr.msk.f32.vlgmr.msra.gmra.mxu0 %vm90_vm0, %v67_v3  ;;  %5183 = vmatmul.mubr.msk.f32.vlgmr.msra.gmra.mxu1 %vm90_vm0, %v67_v3 }
 0x83c   :  { %5185 = vmatprep.subr.mxu0 %v2432_v4  ;;  %5196 = vmatprep.subr.mxu1 %v2436_v5 }
 0x83d   :  { %5186 = vmatpush3.msra.mxu0 %v2432_v4  ;;  %5197 = vmatpush3.msra.mxu1 %v2436_v5 }
 0x83e   :  { %5187 = vmatprep.subr.mxu0 %v2431_v7  ;;  %5198 = vmatprep.subr.mxu1 %v2435_v8 }
 0x83f   :  { %5188 = vmatpush3.msra.mxu0 %v2431_v7  ;;  %5199 = vmatpush3.msra.mxu1 %v2435_v8 }
 0x840   :  { %5189 = vmatprep.subr.mxu0 %v2430_v10  ;;  %5200 = vmatprep.subr.mxu1 %v2434_v35 }
 0x841   :  { %5190 = vmatpush3.msra.mxu0 %v2430_v10  ;;  %5201 = vmatpush3.msra.mxu1 %v2434_v35 }
 0x842   :  { %5191 = vmatprep.subr.mxu0 %v2429_v11  ;;  %5202 = vmatprep.subr.mxu1 %v2433_v19 }
 0x843   :  { %5192 = vmatpush3.msra.mxu0 %v2429_v11  ;;  %5193 = vmatprep.mubr.msk.f32.mxu0 %vm90_vm0, %v66_v2 }
 0x844   :  { %5203 = vmatpush3.msra.mxu1 %v2433_v19  ;;  %5204 = vmatprep.mubr.msk.f32.mxu1 %vm90_vm0, %v66_v2 }
 0x845   :  { %5194 = vmatmul.mubr.msk.f32.vlgmr.msra.gmra.mxu0 %vm90_vm0, %v67_v3  ;;  %5205 = vmatmul.mubr.msk.f32.vlgmr.msra.gmra.mxu1 %vm90_vm0, %v67_v3 }
 0x846   :  { %5207 = vmatprep.subr.mxu0 %v5459_v18  ;;  %5212 = vmatprep.subr.mxu1 %v5459_v18 }
 0x847   :  { %5209 = vmatprep.mubr.msk.f32.mxu0 %vm5460_vm1, %v5459_v18  ;;  %5214 = vmatprep.mubr.msk.f32.mxu1 %vm5460_vm1, %v5459_v18 }
 0x8e8   :  { %v5965_v12 = vpop.f32.mrf.mxu0  ;;  %v5967_v13 = vpop.f32.mrf.mxu1 }
 0x8ea   :  { %v2187_v14 = vpop.f32.mrf.mxu0  ;;  %v2262_v15 = vpop.f32.mrf.mxu1 }
 0x8f1   :  { %v5969_v16 = vpop.f32.mrf.mxu0  ;;  %v5971_v17 = vpop.f32.mrf.mxu1 }
 0x8f3   :  { %v2337_v20 = vpop.f32.mrf.mxu0  ;;  %v2412_v22 = vpop.f32.mrf.mxu1 }
 0x8fb   :  { %v5973_v24 = vpop.f32.mrf.mxu0  ;;  %v5975_v26 = vpop.f32.mrf.mxu1 }
 0x8fd   :  { %v2509_v9 = vpop.f32.mrf.mxu0  ;;  %v5977_v6 = vpop.f32.mrf.mxu1 }
 0x8fe   :  { %5208 = vmatpush3.xpose.msk.msra.mxu0 %vm404_vm2, %v2509_v9  ;;  %5213 = vmatpush3.xpose.msk.msra.mxu1 %vm404_vm2, %v5977_v6 }
 0x8ff   :  { %5217 = vmatprep.subr.mxu0 %v5459_v18  ;;  %5222 = vmatprep.subr.mxu1 %v5459_v18 }
 0x901   :  { %5210 = vmatmul.mubr.msk.f32.vlgmr.msra.gmra.mxu0 %vm404_vm2, %v2187_v14  ;;  %5215 = vmatmul.mubr.msk.f32.vlgmr.msra.gmra.mxu1 %vm404_vm2, %v2262_v15 }
 0x902   :  { %5219 = vmatprep.mubr.msk.f32.mxu0 %vm5460_vm1, %v5459_v18  ;;  %5224 = vmatprep.mubr.msk.f32.mxu1 %vm5460_vm1, %v5459_v18 }
 0x905   :  { %v5990_v27 = vpop.f32.mrf.mxu0  ;;  %v5992_v28 = vpop.f32.mrf.mxu1 }
 0x907   :  { %v5994_v29 = vpop.f32.mrf.mxu0  ;;  %v5996_v23 = vpop.f32.mrf.mxu1 }
 0x908   :  { %5218 = vmatpush3.xpose.msk.msra.mxu0 %vm404_vm2, %v5994_v29  ;;  %5223 = vmatpush3.xpose.msk.msra.mxu1 %vm404_vm2, %v5996_v23 }
 0x909   :  { %5227 = vmatprep.subr.mxu0 %v5459_v18  ;;  %5232 = vmatprep.subr.mxu1 %v5459_v18 }
 0x90b   :  { %5220 = vmatmul.mubr.msk.f32.vlgmr.msra.gmra.mxu0 %vm404_vm2, %v2337_v20  ;;  %5225 = vmatmul.mubr.msk.f32.vlgmr.msra.gmra.mxu1 %vm404_vm2, %v2412_v22 }
 0x90c   :  { %5229 = vmatprep.mubr.msk.f32.mxu0 %vm5460_vm1, %v5459_v18  ;;  %5234 = vmatprep.mubr.msk.f32.mxu1 %vm5460_vm1, %v5459_v18 }
 0x9c1   :  { %v2823_v21 = vpop.f32.mrf.mxu0  ;;  %v2899_v31 = vpop.f32.mrf.mxu1 }
 0x9c2   :  { %v2824_v32 = vadd.f32 %v2823_v21, %v2750_v25  ;;  %v2900_v36 = vadd.f32 %v2899_v31, %v2750_v25 }
 0x9c3   :  { %v5211_v37 = vpop.f32.mrf.mxu0  ;;  %v5216_v39 = vpop.f32.mrf.mxu1 }
 0x9c4   :  { %v3058_v41 = vsel %vm404_vm2, %v2900_v36, -inf  ;;  %v3055_v43 = vsel %vm404_vm2, %v2824_v32, -inf }
 0x9c5   :  { %3059 = vmax.xlane.f32.xlu0 %v3058_v41  ;;  %3056 = vmax.xlane.f32.xlu1 %v3055_v43 }
 0x9cb   :  { %v2975_v45 = vpop.f32.mrf.mxu0  ;;  %v3051_v38 = vpop.f32.mrf.mxu1 }
 0x9cc   :  { %v2976_v46 = vadd.f32 %v2975_v45, %v2750_v25  ;;  %v3052_v40 = vadd.f32 %v3051_v38, %v2750_v25 }
 0x9cd   :  { %v5221_v47 = vpop.f32.mrf.mxu0  ;;  %v5226_v48 = vpop.f32.mrf.mxu1 }
 0x9ce   :  { %v3064_v49 = vsel %vm404_vm2, %v3052_v40, -inf  ;;  %v3061_v50 = vsel %vm404_vm2, %v2976_v46, -inf }
 0x9cf   :  { %3065 = vmax.xlane.f32.xlu0 %v3064_v49  ;;  %3062 = vmax.xlane.f32.xlu1 %v3061_v50 }
 0x9e0   :  { %3099 = vrot.lane.b32.xlu1 %v2509_v9, %s5461_s3 }
 0xa4e   :  { %v3060_v52 = vpop.xlane.xlu0 %3059  ;;  %v3057_v54 = vpop.xlane.xlu1 %3056 }
 0xa4f   :  { %v3068_v42 = vsub.f32 %v2900_v36, %v3060_v52  ;;  %v3067_v55 = vsub.f32 %v2824_v32, %v3057_v54  ;;  %v3404_v36 = vstv %s4768_s27 }
 0xa50   :  { %vm3405_vm5 = vcmp.lt.s32.totalorder %v5677_v33, %v3404_v36 }
 0xa51   :  { %v3073_v56 = vmul.f32 1.442695, %v3068_v42  ;;  %v3071_v57 = vmul.f32 1.442695, %v3067_v55  ;;  %v3406_v39 = vsel %vm3405_vm5, 0.0, %v5462_v34 }
 0xa53   :  { %5382 = vpow2.f32 %v3073_v56 }
 0xa54   :  { %5384 = vpow2.f32 %v3071_v57 }
 0xa58   :  { %v3066_v58 = vpop.xlane.xlu0 %3065  ;;  %v3063_v59 = vpop.xlane.xlu1 %3062 }
 0xa59   :  { %v3070_v60 = vsub.f32 %v3052_v40, %v3066_v58  ;;  %v3069_v61 = vsub.f32 %v2976_v46, %v3063_v59 }
 0xa5b   :  { %v3077_v44 = vmul.f32 1.442695, %v3070_v60  ;;  %v3075_v62 = vmul.f32 1.442695, %v3069_v61 }
 0xa5c   :  { %v3100_v63 = vpop.permute.xlu1 %3099 }
 0xa5d   :  { %5386 = vpow2.f32 %v3077_v44  ;;  %5228 = vmatpush3.msra.mxu0 %v3100_v63 }
 0xa5e   :  { %5388 = vpow2.f32 %v3075_v62  ;;  %5237 = vmatprep.subr.mxu0 %v5459_v18 }
 0xa60   :  { %v5383_v0 = vpop.eup %5382 }
 0xa61   :  { %v5385_v1 = vpop.eup %5384  ;;  %v3082_v2 = vsel %vm404_vm2, %v5383_v0, 0.0 }
 0xa62   :  { %3083 = vadd.xlane.f32.xlu0 %v3082_v2  ;;  %v3079_v3 = vsel %vm404_vm2, %v5385_v1, 0.0 }
 0xa63   :  { %3080 = vadd.xlane.f32.xlu1 %v3079_v3 }
 0xa6a   :  { %v5387_v4 = vpop.eup %5386 }
 0xa6b   :  { %v5389_v5 = vpop.eup %5388  ;;  %v3088_v7 = vsel %vm404_vm2, %v5387_v4, 0.0 }
 0xa6c   :  { %3089 = vadd.xlane.f32.xlu0 %v3088_v7  ;;  %v3085_v8 = vsel %vm404_vm2, %v5389_v5, 0.0 }
 0xa6d   :  { %3086 = vadd.xlane.f32.xlu1 %v3085_v8 }
 0xa7e   :  { %3251 = vrot.lane.b32.xlu1 %v5994_v29, %s5461_s3 }
 0xa82   :  { %3327 = vrot.lane.b32.xlu1 %v5996_v23, %s5461_s3  ;;  %3175 = vrot.lane.b32.xlu0 %v5977_v6, %s5461_s3 }
 0xaeb   :  { %v3084_v10 = vpop.xlane.xlu0 %3083 }
 0xaec   :  { %5390 = vrcp.f32 %v3084_v10  ;;  %v3081_v35 = vpop.xlane.xlu1 %3080 }
 0xaed   :  { %5392 = vrcp.f32 %v3081_v35 }
 0xaf5   :  { %v3090_v11 = vpop.xlane.xlu0 %3089 }
 0xaf6   :  { %5394 = vrcp.f32 %v3090_v11  ;;  %v3087_v19 = vpop.xlane.xlu1 %3086 }
 0xaf7   :  { %5396 = vrcp.f32 %v3087_v19 }
 0xaf9   :  { %v5391_v14 = vpop.eup %5390  ;;  %v3176_v15 = vpop.permute.xlu0 %3175 }
 0xafa   :  { %v5393_v20 = vpop.eup %5392  ;;  %v3252_v22 = vpop.permute.xlu1 %3251  ;;  %5233 = vmatpush3.msra.mxu1 %v3176_v15  ;;  %v3096_v9 = vmul.f32 %v5391_v14, %v5383_v0 }
 0xafb   :  { %5242 = vmatprep.subr.mxu1 %v5459_v18  ;;  %v3095_v29 = vmul.f32 %v5393_v20, %v5385_v1 }
 0xafc   :  { %5235 = vmatmul.mubr.msk.f32.vlgmr.msra.gmra.mxu1 %vm404_vm2, %v3096_v9 }
 0xafd   :  { %5230 = vmatmul.mubr.msk.f32.vlgmr.msra.gmra.mxu0 %vm404_vm2, %v3095_v29  ;;  %5244 = vmatprep.mubr.msk.f32.mxu1 %vm5460_vm1, %v5459_v18 }
 0xafe   :  { %v3328_v6 = vpop.permute.xlu1 %3327  ;;  %5238 = vmatpush3.msra.mxu0 %v3252_v22  ;;  %5239 = vmatprep.mubr.msk.f32.mxu0 %vm5460_vm1, %v5459_v18 }
 0xaff   :  { %5243 = vmatpush3.msra.mxu1 %v3328_v6  ;;  %5247 = vmatprep.subr.mxu0 %v5459_v18 }
 0xb00   :  { %5252 = vmatprep.subr.mxu1 %v5459_v18 }
 0xb03   :  { %v5395_v23 = vpop.eup %5394 }
 0xb04   :  { %v5397_v30 = vpop.eup %5396  ;;  %v3098_v25 = vmul.f32 %v5395_v23, %v5387_v4 }
 0xb05   :  { %v3097_v21 = vmul.f32 %v5397_v30, %v5389_v5 }
 0xb06   :  { %5245 = vmatmul.mubr.msk.f32.vlgmr.msra.gmra.mxu1 %vm404_vm2, %v3098_v25  ;;  %v2744_v25 = vld [vmem:[%s6217_s7 + $0x8] sm:$0xff] }
 0xb07   :  { %5240 = vmatmul.mubr.msk.f32.vlgmr.msra.gmra.mxu0 %vm404_vm2, %v3097_v21  ;;  %5253 = vmatpush3.xpose.msk.msra.mxu1 %vm404_vm2, %v5975_v26 }
 0xb08   :  { %5248 = vmatpush3.xpose.msk.msra.mxu0 %vm404_vm2, %v5973_v24  ;;  %5249 = vmatprep.mubr.msk.f32.mxu0 %vm5460_vm1, %v5459_v18 }
 0xb09   :  { %5254 = vmatprep.mubr.msk.f32.mxu1 %vm5460_vm1, %v5459_v18  ;;  %5257 = vmatprep.subr.mxu0 %v5459_v18 }
 0xb0a   :  { %5262 = vmatprep.subr.mxu1 %v5459_v18  ;;  %5255 = vmatmul.mubr.msk.f32.vlgmr.msra.gmra.mxu1 %vm404_vm2, %v5967_v13 }
 0xb0b   :  { %5250 = vmatmul.mubr.msk.f32.vlgmr.msra.gmra.mxu0 %vm404_vm2, %v5965_v12  ;;  %5263 = vmatpush3.xpose.msk.msra.mxu1 %vm404_vm2, %v5992_v28 }
 0xb0c   :  { %5258 = vmatpush3.xpose.msk.msra.mxu0 %vm404_vm2, %v5990_v27  ;;  %5259 = vmatprep.mubr.msk.f32.mxu0 %vm5460_vm1, %v5459_v18 }
 0xb0d   :  { %5264 = vmatprep.mubr.msk.f32.mxu1 %vm5460_vm1, %v5459_v18  ;;  %5267 = vmatprep.subr.mxu0 %v5459_v18 }
 0xb0e   :  { %5265 = vmatmul.mubr.msk.f32.vlgmr.msra.gmra.mxu1 %vm404_vm2, %v5971_v17  ;;  %5272 = vmatprep.subr.mxu1 %v5459_v18 }
 0xb0f   :  { %5260 = vmatmul.mubr.msk.f32.vlgmr.msra.gmra.mxu0 %vm404_vm2, %v5969_v16  ;;  %5274 = vmatprep.mubr.msk.f32.mxu1 %vm5460_vm1, %v5459_v18 }
 0xb10   :  { %5269 = vmatprep.mubr.msk.f32.mxu0 %vm5460_vm1, %v5459_v18 }
 0xbbc   :  { %v6071_v12 = vpop.f32.mrf.mxu1 }
 0xbbd   :  { %v6073_v13 = vpop.f32.mrf.mxu0 }
 0xbbe   :  { %v5236_v31 = vpop.f32.mrf.mxu1 }
 0xbbf   :  { %v5231_v32 = vpop.f32.mrf.mxu0 }
 0xbc6   :  { %v6076_v17 = vpop.f32.mrf.mxu1 }
 0xbc7   :  { %v6078_v37 = vpop.f32.mrf.mxu0 }
 0xbc8   :  { %v5246_v16 = vpop.f32.mrf.mxu1 }
 0xbc9   :  { %v5241_v41 = vpop.f32.mrf.mxu0  ;;  %v2746_v16 = vld [vmem:[%s6217_s7 + $0x18] sm:$0xff] }
 0xbca   :  { %v3555_v43 = vpop.f32.mrf.mxu1 }
 0xbcb   :  { %v3479_v45 = vpop.f32.mrf.mxu0  ;;  %v3556_v38 = vadd.f32 %v3555_v43, %v3406_v39 }
 0xbcc   :  { %v3480_v46 = vadd.f32 %v3479_v45, %v3406_v39  ;;  %v5256_v40 = vpop.f32.mrf.mxu1 }
 0xbcd   :  { %v5251_v47 = vpop.f32.mrf.mxu0  ;;  %v3714_v48 = vsel %vm404_vm2, %v3556_v38, -inf }
 0xbce   :  { %3715 = vmax.xlane.f32.xlu1 %v3714_v48  ;;  %v3707_v49 = vpop.f32.mrf.mxu1  ;;  %v3711_v33 = vsel %vm404_vm2, %v3480_v46, -inf }
 0xbcf   :  { %3712 = vmax.xlane.f32.xlu0 %v3711_v33  ;;  %v3631_v50 = vpop.f32.mrf.mxu0  ;;  %v3708_v55 = vadd.f32 %v3707_v49, %v3406_v39 }
 0xbd0   :  { %v3632_v52 = vadd.f32 %v3631_v50, %v3406_v39  ;;  %v5266_v54 = vpop.f32.mrf.mxu1 }
 0xbd1   :  { %v5261_v42 = vpop.f32.mrf.mxu0  ;;  %v3720_v56 = vsel %vm404_vm2, %v3708_v55, -inf }
 0xbd2   :  { %v3717_v34 = vsel %vm404_vm2, %v3632_v52, -inf }
 0xbd3   :  { %3718 = vmax.xlane.f32.xlu0 %v3717_v34 }
 0xbd7   :  { %3721 = vmax.xlane.f32.xlu0 %v3720_v56 }
 0xbdf   :  { %3755 = vrot.lane.b32.xlu1 %v5973_v24, %s5461_s3 }
 0xc57   :  { %v3716_v57 = vpop.xlane.xlu1 %3715 }
 0xc58   :  { %v3724_v58 = vsub.f32 %v3556_v38, %v3716_v57  ;;  %v3713_v59 = vpop.xlane.xlu0 %3712 }
 0xc59   :  { %v3723_v60 = vsub.f32 %v3480_v46, %v3713_v59 }
 0xc5a   :  { %v3729_v61 = vmul.f32 1.442695, %v3724_v58 }
 0xc5b   :  { %v3727_v44 = vmul.f32 1.442695, %v3723_v60  ;;  %v3756_v62 = vpop.permute.xlu1 %3755 }
 0xc5c   :  { %5398 = vpow2.f32 %v3729_v61  ;;  %v3719_v63 = vpop.xlane.xlu0 %3718  ;;  %5268 = vmatpush3.msra.mxu0 %v3756_v62 }
 0xc5d   :  { %5400 = vpow2.f32 %v3727_v44  ;;  %v3725_v0 = vsub.f32 %v3632_v52, %v3719_v63  ;;  %5277 = vmatprep.subr.mxu0 %v5459_v18 }
 0xc5f   :  { %v3731_v1 = vmul.f32 1.442695, %v3725_v0 }
 0xc60   :  { %v3722_v2 = vpop.xlane.xlu0 %3721 }
 0xc61   :  { %5402 = vpow2.f32 %v3731_v1  ;;  %v3726_v3 = vsub.f32 %v3708_v55, %v3722_v2 }
 0xc63   :  { %v3733_v4 = vmul.f32 1.442695, %v3726_v3 }
 0xc65   :  { %5404 = vpow2.f32 %v3733_v4 }
 0xc69   :  { %v5399_v24 = vpop.eup %5398 }
 0xc6a   :  { %v5401_v5 = vpop.eup %5400  ;;  %v3738_v7 = vsel %vm404_vm2, %v5399_v24, 0.0 }
 0xc6b   :  { %v3735_v8 = vsel %vm404_vm2, %v5401_v5, 0.0  ;;  %3739 = vadd.xlane.f32.xlu0 %v3738_v7 }
 0xc6c   :  { %3736 = vadd.xlane.f32.xlu1 %v3735_v8 }
 0xc6e   :  { %v5403_v10 = vpop.eup %5402 }
 0xc6f   :  { %v3741_v35 = vsel %vm404_vm2, %v5403_v10, 0.0 }
 0xc70   :  { %3742 = vadd.xlane.f32.xlu1 %v3741_v35 }
 0xc72   :  { %v5405_v11 = vpop.eup %5404 }
 0xc73   :  { %v3744_v19 = vsel %vm404_vm2, %v5405_v11, 0.0 }
 0xc74   :  { %3745 = vadd.xlane.f32.xlu0 %v3744_v19 }
 0xc81   :  { %3907 = vrot.lane.b32.xlu1 %v5990_v27, %s5461_s3 }
 0xc85   :  { %3983 = vrot.lane.b32.xlu1 %v5992_v28, %s5461_s3 }
 0xc8a   :  { %3831 = vrot.lane.b32.xlu0 %v5975_v26, %s5461_s3  ;;  %v2743_v26 = vld [vmem:[%s6217_s7] sm:$0xff] }
 0xcf4   :  { %v3740_v14 = vpop.xlane.xlu0 %3739 }
 0xcf5   :  { %v3737_v15 = vpop.xlane.xlu1 %3736  ;;  %5406 = vrcp.f32 %v3740_v14  ;;  %v4445_v14 = vld [vmem:[%s6224_s14 + $0x10] sm:$0xff] }
 0xcf6   :  { %5408 = vrcp.f32 %v3737_v15  ;;  %v4444_v15 = vld [vmem:[%s6224_s14 + $0x8] sm:$0xff] }
 0xcf9   :  { %v3743_v20 = vpop.xlane.xlu1 %3742 }
 0xcfa   :  { %5410 = vrcp.f32 %v3743_v20  ;;  %v4443_v20 = vld [vmem:[%s6224_s14] sm:$0xff] }
 0xcfd   :  { %v3746_v22 = vpop.xlane.xlu0 %3745  ;;  %v3908_v9 = vpop.permute.xlu1 %3907 }
 0xcfe   :  { %5412 = vrcp.f32 %v3746_v22  ;;  %v4544_v22 = vld [vmem:[%s6226_s16 + $0x38] sm:$0xff] }
 0xd01   :  { %v3832_v29 = vpop.permute.xlu0 %3831  ;;  %v3984_v30 = vpop.permute.xlu1 %3983 }
 0xd02   :  { %v5407_v6 = vpop.eup %5406  ;;  %5273 = vmatpush3.msra.mxu1 %v3832_v29  ;;  %v4542_v29 = vld [vmem:[%s6226_s16 + $0x28] sm:$0xff] }
 0xd03   :  { %v5409_v23 = vpop.eup %5408  ;;  %5282 = vmatprep.subr.mxu1 %v5459_v18  ;;  %v3752_v27 = vmul.f32 %v5407_v6, %v5399_v24  ;;  %v4541_v6 = vld [vmem:[%s6226_s16 + $0x20] sm:$0xff] }
 0xd04   :  { %v3751_v28 = vmul.f32 %v5409_v23, %v5401_v5 }
 0xd05   :  { %5275 = vmatmul.mubr.msk.f32.vlgmr.msra.gmra.mxu1 %vm404_vm2, %v3752_v27 }
 0xd06   :  { %5270 = vmatmul.mubr.msk.f32.vlgmr.msra.gmra.mxu0 %vm404_vm2, %v3751_v28  ;;  %5283 = vmatpush3.msra.mxu1 %v3984_v30 }
 0xd07   :  { %v5411_v21 = vpop.eup %5410  ;;  %5278 = vmatpush3.msra.mxu0 %v3908_v9  ;;  %5279 = vmatprep.mubr.msk.f32.mxu0 %vm5460_vm1, %v5459_v18  ;;  %v4543_v9 = vld [vmem:[%s6226_s16 + $0x30] sm:$0xff] }
 0xd08   :  { %v3753_v31 = vmul.f32 %v5411_v21, %v5403_v10  ;;  %5284 = vmatprep.mubr.msk.f32.mxu1 %vm5460_vm1, %v5459_v18  ;;  %5287 = vmatprep.subr.mxu0 %v2743_v26  ;;  %v2745_v18 = vld [vmem:[%s6217_s7 + $0x10] sm:$0xff] }
 0xd09   :  { %5292 = vmatprep.subr.mxu1 %v2744_v25 }
 0xd0a   :  { %5280 = vmatmul.mubr.msk.f32.vlgmr.msra.gmra.mxu0 %vm404_vm2, %v3753_v31  ;;  %v4789_v31 = vld [vmem:[%s6220_s10] ss:$0 sm:$0xff] }
 0xd0b   :  { %v5413_v32 = vpop.eup %5412  ;;  %5289 = vmatprep.mubr.msk.f32.mxu0 %vm404_vm2, %v6073_v13  ;;  %5288 = vmatpush3.msra.mxu0 %v2743_v26 }
 0xd0c   :  { %v3754_v36 = vmul.f32 %v5413_v32, %v5405_v11  ;;  %5297 = vmatprep.subr.mxu0 %v2745_v18 }
 0xd0e   :  { %5285 = vmatmul.mubr.msk.f32.vlgmr.msra.gmra.mxu1 %vm404_vm2, %v3754_v36  ;;  %v4790_v36 = vld [vmem:[%s6221_s11] ss:$0 sm:$0xff] }
 0xd0f   :  { %5294 = vmatprep.mubr.msk.f32.mxu1 %vm404_vm2, %v6071_v12  ;;  %5293 = vmatpush3.msra.mxu1 %v2744_v25 }
 0xd10   :  { %5302 = vmatprep.subr.mxu1 %v2746_v16 }
 0xdc5   :  { %v3903_v39 = vpop.f32.mrf.mxu1 }
 0xdc6   :  { %v3827_v13 = vpop.f32.mrf.mxu0  ;;  %5295 = vmatmul.mubr.msk.f32.vlgmr.msra.gmra.mxu1 %vm404_vm2, %v3903_v39 }
 0xdc7   :  { %5290 = vmatmul.mubr.msk.f32.vlgmr.msra.gmra.mxu0 %vm404_vm2, %v3827_v13  ;;  %v5276_v41 = vpop.f32.mrf.mxu1  ;;  %5304 = vmatprep.mubr.msk.f32.mxu1 %vm404_vm2, %v6076_v17 }
 0xdc8   :  { %v5271_v12 = vpop.f32.mrf.mxu0  ;;  %5299 = vmatprep.mubr.msk.f32.mxu0 %vm404_vm2, %v6078_v37  ;;  %5298 = vmatpush3.msra.mxu0 %v2745_v18 }
 0xdc9   :  { %5303 = vmatpush3.msra.mxu1 %v2746_v16 }
 0xdca   :  { %v3979_v43 = vpop.f32.mrf.mxu0  ;;  %5318 = vmatprep.subr.mxu1 %v4544_v22 }
 0xdcb   :  { %5300 = vmatmul.mubr.msk.f32.vlgmr.msra.gmra.mxu0 %vm404_vm2, %v3979_v43  ;;  %v4540_v43 = vld [vmem:[%s6226_s16 + $0x18] sm:$0xff] }
 0xdcc   :  { %v5281_v45 = vpop.f32.mrf.mxu0 }
 0xdcd   :  { %v4539_v45 = vld [vmem:[%s6226_s16 + $0x10] sm:$0xff] }
 0xdce   :  { %v4055_v38 = vpop.f32.mrf.mxu1 }
 0xdcf   :  { %5305 = vmatmul.mubr.msk.f32.vlgmr.msra.gmra.mxu1 %vm404_vm2, %v4055_v38  ;;  %v4538_v38 = vld [vmem:[%s6226_s16 + $0x8] sm:$0xff] }
 0xdd0   :  { %v5286_v46 = vpop.f32.mrf.mxu1  ;;  %5319 = vmatpush3.msra.mxu1 %v4544_v22 }
 0xdd1   :  { %5320 = vmatprep.subr.mxu1 %v4543_v9  ;;  %v4537_v46 = vld [vmem:[%s6226_s16] sm:$0xff] }
 0xdd2   :  { %5321 = vmatpush3.msra.mxu1 %v4543_v9 }
 0xdd3   :  { %5322 = vmatprep.subr.mxu1 %v4542_v29 }
 0xdd4   :  { %5323 = vmatpush3.msra.mxu1 %v4542_v29 }
 0xdd5   :  { %5324 = vmatprep.subr.mxu1 %v4541_v6 }
 0xdd6   :  { %5325 = vmatpush3.msra.mxu1 %v4541_v6 }
 0xdd7   :  { %5326 = vmatprep.subr.mxu1 %v4540_v43 }
 0xdd8   :  { %5327 = vmatpush3.msra.mxu1 %v4540_v43 }
 0xdd9   :  { %5328 = vmatprep.subr.mxu1 %v4539_v45 }
 0xdda   :  { %5329 = vmatpush3.msra.mxu1 %v4539_v45 }
 0xddb   :  { %5330 = vmatprep.subr.mxu1 %v4538_v38 }
 0xddc   :  { %5331 = vmatpush3.msra.mxu1 %v4538_v38 }
 0xddd   :  { %5332 = vmatprep.subr.mxu1 %v4537_v46 }
 0xdde   :  { %5333 = vmatpush3.msra.mxu1 %v4537_v46 }
 0xe86   :  { %v5296_v40 = vpop.f32.mrf.mxu1 }
 0xe87   :  { %v5291_v47 = vpop.f32.mrf.mxu0  ;;  %v4391_v33 = vsel %vm90_vm0, %v5296_v40, 0.0  ;;  %v4791_v40 = vld [vmem:[%s6225_s15] ss:$0 sm:$0xff] }
 0xe88   :  { %v4212_v49 = vpop.f32.mrf.mxu1  ;;  %v4390_v17 = vsel %vm90_vm0, %v5291_v47, 0.0 }
 0xe89   :  { %v4131_v48 = vpop.f32.mrf.mxu0  ;;  %v4384_v52 = vsel %vm90_vm0, %v4212_v49, 0.0  ;;  %v4392_v42 = vadd.f32 %v4391_v33, %v4390_v17 }
 0xe8a   :  { %v4383_v37 = vsel %vm90_vm0, %v4131_v48, 0.0 }
 0xe8b   :  { %v5301_v50 = vpop.f32.mrf.mxu0  ;;  %v4385_v56 = vadd.f32 %v4384_v52, %v4383_v37  ;;  %v4794_v37 = vld [vmem:[%s6227_s17] ss:$0 sm:$0xff]  ;;  %s6238_s17 = sld [smem:[#allocation11_spill]] }
 0xe8c   :  { %v4393_v54 = vsel %vm90_vm0, %v5301_v50, 0.0 }
 0xe8d   :  { %v4293_v55 = vpop.f32.mrf.mxu0  ;;  %v4394_v57 = vadd.f32 %v4393_v54, %v4392_v42 }
 0xe8e   :  { %v4386_v34 = vsel %vm90_vm0, %v4293_v55, 0.0 }
 0xe8f   :  { %v5306_v58 = vpop.f32.mrf.mxu1  ;;  %v4387_v60 = vadd.f32 %v4386_v34, %v4385_v56 }
 0xe90   :  { %v4395_v59 = vsel %vm90_vm0, %v5306_v58, 0.0 }
 0xe91   :  { %v4396_v61 = vadd.f32 %v4395_v59, %v4394_v57  ;;  %v4374_v44 = vpop.f32.mrf.mxu1 }
 0xe92   :  { %v4388_v62 = vsel %vm90_vm0, %v4374_v44, 0.0 }
 0xe93   :  { %v4389_v63 = vadd.f32 %v4388_v62, %v4387_v60  ;;  %v4398_v0 = vadd.f32 %v4396_v61, %v5865_v53 }
 0xe95   :  { %v4404_v1 = vsel %vm90_vm0, %v4398_v0, 0.0  ;;  %v4397_v2 = vadd.f32 %v4389_v63, %v5859_v51  ;;  %v4446_v51 = vld [vmem:[%s6224_s14 + $0x18] sm:$0xff] }
 0xe96   :  { %4405 = vadd.xlane.f32.xlu1 %v4404_v1  ;;  %5307 = vmatprep.subr.mxu0 %v4446_v51 }
 0xe97   :  { %v4401_v3 = vsel %vm90_vm0, %v4397_v2, 0.0  ;;  %5308 = vmatpush3.msra.mxu0 %v4446_v51  ;;  %v4798_v51 = vld [vmem:[%s6223_s13] ss:$0 sm:$0xff] }
 0xe98   :  { %4402 = vadd.xlane.f32.xlu0 %v4401_v3  ;;  %5309 = vmatprep.subr.mxu0 %v4445_v14 }
 0xe99   :  { %5310 = vmatpush3.msra.mxu0 %v4445_v14 }
 0xe9a   :  { %5311 = vmatprep.subr.mxu0 %v4444_v15 }
 0xe9b   :  { %5312 = vmatpush3.msra.mxu0 %v4444_v15 }
 0xe9c   :  { %5313 = vmatprep.subr.mxu0 %v4443_v20 }
 0xe9d   :  { %5314 = vmatpush3.msra.mxu0 %v4443_v20 }
 0xf1f   :  { %v4406_v4 = vpop.xlane.xlu1 %4405 }
 0xf20   :  { %v4408_v24 = vmul.f32 0.03125, %v4406_v4 }
 0xf21   :  { %v4403_v5 = vpop.xlane.xlu0 %4402 }
 0xf22   :  { %v4407_v7 = vmul.f32 0.03125, %v4403_v5  ;;  %v4410_v8 = vsub.f32 %v4398_v0, %v4408_v24 }
 0xf24   :  { %v4409_v10 = vsub.f32 %v4397_v2, %v4407_v7  ;;  %v4412_v19 = vmul.f32 %v4410_v8, %v4410_v8 }
 0xf26   :  { %v4411_v35 = vmul.f32 %v4409_v10, %v4409_v10  ;;  %v4416_v53 = vsel %vm90_vm0, %v4412_v19, 0.0 }
 0xf28   :  { %v4413_v11 = vsel %vm90_vm0, %v4411_v35, 0.0 }
 0xf29   :  { %4414 = vadd.xlane.f32.xlu0 %v4413_v11  ;;  %v4797_v11 = vld [vmem:[%s6238_s17] ss:$0 sm:$0xff] }
 0xf2d   :  { %4417 = vadd.xlane.f32.xlu0 %v4416_v53 }
 0xfb2   :  { %v4415_v23 = vpop.xlane.xlu0 %4414 }
 0xfb3   :  { %v4419_v27 = vmul.f32 0.03125, %v4415_v23 }
 0xfb5   :  { %v4421_v28 = vadd.f32 1e-05, %v4419_v27 }
 0xfb6   :  { %v4418_v30 = vpop.xlane.xlu0 %4417 }
 0xfb7   :  { %5414 = vrsqrt.f32 %v4421_v28  ;;  %v4420_v26 = vmul.f32 0.03125, %v4418_v30 }
 0xfb9   :  { %v4422_v25 = vadd.f32 1e-05, %v4420_v26 }
 0xfbb   :  { %5416 = vrsqrt.f32 %v4422_v25 }
 0xfc4   :  { %v5415_v21 = vpop.eup %5414 }
 0xfc5   :  { %v4425_v32 = vmul.f32 %v5415_v21, %v4409_v10 }
 0xfc7   :  { %v4433_v18 = vmul.f32 %v4789_v31, %v4425_v32 }
 0xfc8   :  { %v5417_v16 = vpop.eup %5416 }
 0xfc9   :  { %v4426_v39 = vmul.f32 %v5417_v16, %v4410_v8  ;;  %v4441_v13 = vadd.f32 %v4790_v36, %v4433_v18 }
 0xfcb   :  { %v4434_v41 = vmul.f32 %v4789_v31, %v4426_v39  ;;  %5315 = vmatprep.mubr.msk.f32.mxu0 %vm90_vm0, %v4441_v13 }
 0xfcd   :  { %v4442_v12 = vadd.f32 %v4790_v36, %v4434_v41 }
 0xfcf   :  { %5316 = vmatmul.mubr.msk.f32.vlgmr.msra.gmra.mxu0 %vm90_vm0, %v4442_v12 }
0x108f   :  { %v5317_v47 = vpop.f32.mrf.mxu0 }
0x1090   :  { %v4532_v48 = vadd.f32 %v5317_v47, %v4791_v40 }
0x1091   :  { %v4526_v49 = vpop.f32.mrf.mxu0 }
0x1092   :  { %v4527_v17 = vadd.f32 %v4791_v40, %v4526_v49  ;;  %v4536_v50 = vmax.f32 %v4532_v48, 0.0 }
0x1094   :  { %v4535_v33 = vmax.f32 %v4527_v17, 0.0 }
0x1096   :  { %5334 = vmatprep.mubr.msk.f32.mxu1 %vm4552_vm6, %v4535_v33 }
0x1097   :  { %5335 = vmatmul.mubr.msk.f32.vlgmr.msra.gmra.mxu1 %vm4552_vm6, %v4536_v50 }
0x1157   :  { %v5336_v52 = vpop.f32.mrf.mxu1 }
0x1158   :  { %v4631_v54 = vadd.f32 %v5336_v52, %v4794_v37 }
0x1159   :  { %v4625_v42 = vpop.f32.mrf.mxu1 }
0x115a   :  { %v4626_v55 = vadd.f32 %v4794_v37, %v4625_v42  ;;  %v4635_v34 = vadd.f32 %v4631_v54, %v4442_v12 }
0x115c   :  { %v4641_v56 = vsel %vm90_vm0, %v4635_v34, 0.0  ;;  %v4634_v57 = vadd.f32 %v4626_v55, %v4441_v13 }
0x115d   :  { %4642 = vadd.xlane.f32.xlu0 %v4641_v56 }
0x115e   :  { %v4638_v58 = vsel %vm90_vm0, %v4634_v57, 0.0 }
0x115f   :  { %4639 = vadd.xlane.f32.xlu1 %v4638_v58 }
0x11e6   :  { %v4643_v59 = vpop.xlane.xlu0 %4642 }
0x11e7   :  { %v4645_v60 = vmul.f32 0.03125, %v4643_v59 }
0x11e8   :  { %v4640_v61 = vpop.xlane.xlu1 %4639 }
0x11e9   :  { %v4647_v44 = vsub.f32 %v4635_v34, %v4645_v60  ;;  %v4644_v62 = vmul.f32 0.03125, %v4640_v61 }
0x11eb   :  { %v4646_v63 = vsub.f32 %v4634_v57, %v4644_v62  ;;  %v4649_v0 = vmul.f32 %v4647_v44, %v4647_v44 }
0x11ed   :  { %v4653_v1 = vsel %vm90_vm0, %v4649_v0, 0.0  ;;  %v4648_v2 = vmul.f32 %v4646_v63, %v4646_v63 }
0x11ee   :  { %4654 = vadd.xlane.f32.xlu0 %v4653_v1 }
0x11ef   :  { %v4650_v3 = vsel %vm90_vm0, %v4648_v2, 0.0 }
0x11f0   :  { %4651 = vadd.xlane.f32.xlu1 %v4650_v3 }
0x1277   :  { %v4655_v4 = vpop.xlane.xlu0 %4654 }
0x1278   :  { %v4657_v24 = vmul.f32 0.03125, %v4655_v4 }
0x1279   :  { %v4652_v5 = vpop.xlane.xlu1 %4651 }
0x127a   :  { %v4659_v7 = vadd.f32 1e-05, %v4657_v24  ;;  %v4656_v8 = vmul.f32 0.03125, %v4652_v5 }
0x127c   :  { %5418 = vrsqrt.f32 %v4659_v7  ;;  %v4658_v10 = vadd.f32 1e-05, %v4656_v8 }
0x127e   :  { %5420 = vrsqrt.f32 %v4658_v10 }
0x1289   :  { %v5419_v35 = vpop.eup %5418 }
0x128a   :  { %v4663_v19 = vmul.f32 %v5419_v35, %v4647_v44 }
0x128b   :  { %v5421_v53 = vpop.eup %5420 }
0x128c   :  { %v4662_v14 = vmul.f32 %v5421_v53, %v4646_v63  ;;  %v4671_v15 = vmul.f32 %v4797_v11, %v4663_v19 }
0x128e   :  { %v4670_v20 = vmul.f32 %v4797_v11, %v4662_v14  ;;  %v4679_v22 = vadd.f32 %v4798_v51, %v4671_v15 }
0x1290   :  { %v4678_v9 = vadd.f32 %v4798_v51, %v4670_v20  ;;  %4681 = vst.msk [vmem:[#allocation4 + $0x8] sm:$0xff] %vm90_vm0, %v4679_v22 }
0x1292   :  { %4680 = vst.msk [vmem:[#allocation4] sm:$0xff] %vm90_vm0, %v4678_v9 }
0x1293   :  { %5445 = shalt.err (!%p5442_p9)
}
0x1294   :  { %s5465_s13 = smov 128   ;;  %s5466_s25 = smov 8  }
0x1295   :  { %4693 = dma.vmem_to_hbm [thread:$0]  %s4688_s24, 256, %s6228_s18, [#allocation5], %s5465_s13, %s5465_s13, %s5466_s25  }
0x1296   :  { %5456 = dma.done.wait [#allocation5], 256  }
0x1297   :  { %5457 = vsyncadd [#allocation5], 4294967040 }
0x1298   :  { %4697 = vsyncpa [#allocation5], 1 }

</bundles_post_ra>
